<compile_context>
chip_gen: v5e
topology: v5e:2x2
jax: 0.10.0
libtpu: 0.0.40
codegen_flags: <defaults>
</compile_context>

<pallas_src>
import functools

import jax
import jax.numpy as jnp
from jax.experimental import pallas as pl
from jax.experimental.pallas import tpu as pltpu


def _mha_kernel(x_ref, wqkv_ref, bqkv_ref, wp_ref, bp_ref, o_ref, *,
                num_heads, head_dim, block_b, seq_len, emb):
    n_rows = block_b * seq_len

    # ---- Fused Q|K|V projection: one (N, E) @ (E, 3E) MXU matmul (bf16 in, f32 acc).
    xb = x_ref[...].astype(jnp.bfloat16)                            # (N, E)
    qkv = jnp.dot(xb, wqkv_ref[...],
                  preferred_element_type=jnp.float32) + bqkv_ref[...]   # (N, 3E) f32
    # 1/sqrt(head_dim) is already folded into the Q columns of wqkv / bqkv.
    qkv = qkv.astype(jnp.bfloat16).reshape(block_b, seq_len, 3 * emb)

    wp = wp_ref[...]                                                # (E, E) bf16
    # Start the output accumulator from the projection bias (broadcast once).
    acc = jnp.zeros((n_rows, emb), jnp.float32) + bp_ref[...]       # (N, E) f32

    for h in range(num_heads):
        lo = h * head_dim
        qh = qkv[:, :, lo:lo + head_dim]                            # (Bb, S, D) (scaled)
        kh = qkv[:, :, emb + lo:emb + lo + head_dim]                # (Bb, S, D)
        vh = qkv[:, :, 2 * emb + lo:2 * emb + lo + head_dim]        # (Bb, S, D)

        # Scores, batched over the block's batch rows: bqd,bkd->bqk.
        e = jnp.einsum('bqd,bkd->bqk', qh, kh,
                       preferred_element_type=jnp.float32)          # (Bb, S, S) f32

        # Numerically-stable softmax over keys (f32).
        e_max = jnp.max(e, axis=-1, keepdims=True)
        p = jnp.exp(e - e_max)
        p = p * pl.reciprocal(jnp.sum(p, axis=-1, keepdims=True), approx=True)
        # attn_dropout has p=0 -> identity.

        ctx = jnp.einsum('bqk,bkd->bqd', p.astype(jnp.bfloat16), vh,
                         preferred_element_type=jnp.float32)        # (Bb, S, D) f32

        # Fold the head concat into the output projection:
        #   concat_h(ctx_h) @ Wp == sum_h ctx_h @ Wp[h*D:(h+1)*D, :]
        acc = acc + jnp.dot(ctx.reshape(n_rows, head_dim).astype(jnp.bfloat16),
                            wp[lo:lo + head_dim, :],
                            preferred_element_type=jnp.float32)

    o_ref[...] = acc.astype(o_ref.dtype)


def _choose_block_b(batch, seq_len):
    """Batch elements per grid step: target ~256 matmul rows, keep >=2 grid steps."""
    target = max(1, 256 // max(seq_len, 1))
    bb = min(batch, target)
    while bb > 1 and batch % bb != 0:
        bb -= 1
    while bb > 1 and batch // bb < 2:          # keep both TensorCores busy on v7x
        nb = bb // 2
        while nb > 1 and batch % nb != 0:
            nb -= 1
        bb = max(1, nb)
    return bb


def _vmem_limit_bytes(n_rows, emb):
    """Conservative scoped-VMEM budget (kept well under v7x's 64 MiB physical)."""
    act = 2 * 2 * n_rows * emb * 4                      # in + out blocks, double-buffered
    wts = (3 * emb * emb + emb * emb) * 2 + 4 * emb * 4  # bf16 weights + f32 biases
    scratch = 8 * n_rows * emb * 4                       # headroom for f32 temporaries
    need = act + wts + scratch
    return int(min(48 * 1024 * 1024, max(16 * 1024 * 1024, 2 * need)))


def fuse_params(params, num_heads):
    """Fuse Q|K|V weights into one (E, 3E) matrix, fold the attention scaling into Q,
    and cast weights to bf16 (biases stay f32). Done once, wrapper-side."""
    emb = params["wq"].shape[0]
    scaling = float(emb // num_heads) ** -0.5
    wqkv = jnp.concatenate(
        [params["wq"] * scaling, params["wk"], params["wv"]], axis=1)
    bqkv = jnp.concatenate(
        [params["bq"] * scaling, params["bk"], params["bv"]], axis=1)
    return {
        "wqkv": wqkv.astype(jnp.bfloat16),   # (E, 3E)
        "bqkv": bqkv.astype(jnp.float32),    # (1, 3E)
        "wp": params["wp"].astype(jnp.bfloat16),   # (E, E)
        "bp": params["bp"].astype(jnp.float32),    # (1, E)
    }


def multi_head_attention(x, fused, num_heads):
    """x: (B, S, E) float32. fused: output of fuse_params."""
    B, S, E = x.shape
    assert E % num_heads == 0
    head_dim = E // num_heads

    block_b = _choose_block_b(B, S)
    n_rows = block_b * S
    grid = (B // block_b,)

    kernel = functools.partial(
        _mha_kernel, num_heads=num_heads, head_dim=head_dim,
        block_b=block_b, seq_len=S, emb=E)

    # Present tokens as a 2-D (B*S, E) slab; each grid step handles block_b*S rows.
    x2 = x.reshape(B * S, E)

    row_spec = pl.BlockSpec((n_rows, E), lambda b: (b, 0))
    def full_spec(shape):
        return pl.BlockSpec(shape, lambda b: (0, 0))

    flops = 2 * B * S * E * (4 * E + 2 * S)
    transcendentals = B * num_heads * S * S
    bytes_accessed = (2 * B * S * E) * 4 + (3 * E * E + E * E) * 2 + 4 * E * 4

    out2 = pl.pallas_call(
        kernel,
        out_shape=jax.ShapeDtypeStruct((B * S, E), x.dtype),
        grid_spec=pltpu.PrefetchScalarGridSpec(
            num_scalar_prefetch=0,
            grid=grid,
            in_specs=[
                row_spec,                      # x rows
                full_spec((E, 3 * E)),         # fused QKV weight (bf16)
                full_spec((1, 3 * E)),         # fused QKV bias (f32)
                full_spec((E, E)),             # projection weight (bf16)
                full_spec((1, E)),             # projection bias (f32)
            ],
            out_specs=row_spec,
        ),
        compiler_params=pltpu.CompilerParams(
            dimension_semantics=("parallel",),
            vmem_limit_bytes=_vmem_limit_bytes(n_rows, E)),
        cost_estimate=pl.CostEstimate(
            flops=flops, transcendentals=transcendentals,
            bytes_accessed=bytes_accessed),
    )(x2, fused["wqkv"], fused["bqkv"], fused["wp"], fused["bp"])

    return out2.reshape(B, S, E)


def _reference_mha(x, params, num_heads):
    """Pure-JAX f32 reference mirroring the PyTorch forward."""
    B, S, E = x.shape
    D = E // num_heads
    scaling = float(D) ** -0.5

    def lin(x, w, b):
        return x @ w + b[0]

    q = lin(x, params["wq"], params["bq"]).reshape(B, S, num_heads, D).transpose(0, 2, 1, 3)
    k = lin(x, params["wk"], params["bk"]).reshape(B, S, num_heads, D).transpose(0, 2, 1, 3)
    v = lin(x, params["wv"], params["bv"]).reshape(B, S, num_heads, D).transpose(0, 2, 1, 3)
    e = jnp.einsum("bhqd,bhkd->bhqk", q, k)
    a = jax.nn.softmax(e * scaling, axis=-1)
    o = jnp.einsum("bhas,bhsd->bhad", a, v)
    o = o.transpose(0, 2, 1, 3).reshape(B, S, E)
    return lin(o, params["wp"], params["bp"])


def init_params(key, emb_size):
    """Deterministic parameter init (synthetic; not a checkpoint load)."""
    keys = jax.random.split(key, 8)
    scale = 1.0 / jnp.sqrt(emb_size)

    def w(k):
        return jax.random.normal(k, (emb_size, emb_size), jnp.float32) * scale

    def b(k):
        return jax.random.normal(k, (1, emb_size), jnp.float32) * 0.01

    return {
        "wq": w(keys[0]), "bq": b(keys[1]),
        "wk": w(keys[2]), "bk": b(keys[3]),
        "wv": w(keys[4]), "bv": b(keys[5]),
        "wp": w(keys[6]), "bp": b(keys[7]),
    }


if __name__ == "__main__":
    # Small shapes consistent with the module: batch=2, seq=16, emb=64, heads=8.
    B, S, E, H = 2, 16, 64, 8

    key = jax.random.PRNGKey(0)
    k_x, k_p = jax.random.split(key)
    x = jax.random.normal(k_x, (B, S, E), jnp.float32)
    params = init_params(k_p, E)
    fused = fuse_params(params, H)

    out = multi_head_attention(x, fused, num_heads=H)
    out = jax.block_until_ready(out)

    ref = _reference_mha(x, params, num_heads=H)
    assert out.shape == (B, S, E)
    # bf16 matmuls + approx reciprocal vs the f32 reference -> widened tolerance.
    assert jnp.allclose(out, ref, atol=1e-1, rtol=1e-2), "mismatch vs reference"

    # TODO(synk): optional attention mask path (module forward's mask=None default) not implemented.
    print("KERNEL_OK")
</pallas_src>

<mosaic_0001>
module attributes {stable_mosaic.version = 11 : i64} {
  func.func @_mha_kernel(%arg0: i32, %arg1: memref<16x64xf32, #tpu.memory_space<vmem>>, %arg2: memref<64x192xbf16, #tpu.memory_space<vmem>>, %arg3: memref<1x192xf32, #tpu.memory_space<vmem>>, %arg4: memref<64x64xbf16, #tpu.memory_space<vmem>>, %arg5: memref<1x64xf32, #tpu.memory_space<vmem>>, %arg6: memref<16x64xf32, #tpu.memory_space<vmem>>) attributes {dimension_semantics = [#tpu.dimension_semantics<parallel>], iteration_bounds = array<i64: 2>, scalar_prefetch = 0 : i64, scratch_operands = 0 : i64, tpu.core_type = #tpu.core_type<tc>, window_params = [{transform_indices = @transform_0, window_bounds = array<i64: 16, 64>}, {pipeline_mode = #tpu.pipeline_mode<synchronous>, transform_indices = @transform_1, window_bounds = array<i64: 64, 192>}, {pipeline_mode = #tpu.pipeline_mode<synchronous>, transform_indices = @transform_2, window_bounds = array<i64: 1, 192>}, {pipeline_mode = #tpu.pipeline_mode<synchronous>, transform_indices = @transform_3, window_bounds = array<i64: 64, 64>}, {pipeline_mode = #tpu.pipeline_mode<synchronous>, transform_indices = @transform_4, window_bounds = array<i64: 1, 64>}, {transform_indices = @transform_5, window_bounds = array<i64: 16, 64>}]} {
    %c0 = arith.constant 0 : index
    %c0_0 = arith.constant 0 : index
    %0 = vector.load %arg1[%c0, %c0_0] : memref<16x64xf32, #tpu.memory_space<vmem>>, vector<16x64xf32>
    %1 = arith.truncf %0 : vector<16x64xf32> to vector<16x64xbf16>
    %c0_1 = arith.constant 0 : index
    %c0_2 = arith.constant 0 : index
    %2 = vector.load %arg2[%c0_1, %c0_2] : memref<64x192xbf16, #tpu.memory_space<vmem>>, vector<64x192xbf16>
    %cst = arith.constant dense<0.000000e+00> : vector<16x192xf32>
    %3 = tpu.matmul %1, %2, %cst {dimension_numbers = #tpu.dot_dimension_numbers<[1], [0], [0], [1], [0, 0, 1, 1], [], []>} : vector<16x64xbf16>, vector<64x192xbf16>, vector<16x192xf32> -> vector<16x192xf32>
    %c0_3 = arith.constant 0 : index
    %c0_4 = arith.constant 0 : index
    %4 = vector.load %arg3[%c0_3, %c0_4] : memref<1x192xf32, #tpu.memory_space<vmem>>, vector<1x192xf32>
    %5 = vector.broadcast %4 : vector<1x192xf32> to vector<16x192xf32>
    %6 = arith.addf %3, %5 : vector<16x192xf32>
    %7 = arith.truncf %6 : vector<16x192xf32> to vector<16x192xbf16>
    %8 = vector.shape_cast %7 : vector<16x192xbf16> to vector<1x16x192xbf16>
    %c0_5 = arith.constant 0 : index
    %c0_6 = arith.constant 0 : index
    %9 = vector.load %arg4[%c0_5, %c0_6] : memref<64x64xbf16, #tpu.memory_space<vmem>>, vector<64x64xbf16>
    %cst_7 = arith.constant 0.000000e+00 : f32
    %10 = vector.broadcast %cst_7 : f32 to vector<16x64xf32>
    %c0_8 = arith.constant 0 : index
    %c0_9 = arith.constant 0 : index
    %11 = vector.load %arg5[%c0_8, %c0_9] : memref<1x64xf32, #tpu.memory_space<vmem>>, vector<1x64xf32>
    %12 = vector.broadcast %11 : vector<1x64xf32> to vector<16x64xf32>
    %13 = arith.addf %10, %12 : vector<16x64xf32>
    %14 = vector.extract_strided_slice %8 {offsets = [0, 0, 0], sizes = [1, 16, 8], strides = [1, 1, 1]} : vector<1x16x192xbf16> to vector<1x16x8xbf16>
    %15 = vector.extract_strided_slice %8 {offsets = [0, 0, 64], sizes = [1, 16, 8], strides = [1, 1, 1]} : vector<1x16x192xbf16> to vector<1x16x8xbf16>
    %16 = vector.extract_strided_slice %8 {offsets = [0, 0, 128], sizes = [1, 16, 8], strides = [1, 1, 1]} : vector<1x16x192xbf16> to vector<1x16x8xbf16>
    "tpu.trace_start"() <{level = 10 : i32, message = "bqd,bkd->bqk"}> : () -> ()
    %cst_10 = arith.constant dense<0.000000e+00> : vector<1x16x16xf32>
    %17 = tpu.matmul %14, %15, %cst_10 {dimension_numbers = #tpu.dot_dimension_numbers<[2], [2], [1], [1], [0, 0, 0, 1, 1, 1], [0], [0]>} : vector<1x16x8xbf16>, vector<1x16x8xbf16>, vector<1x16x16xf32> -> vector<1x16x16xf32>
    "tpu.trace_stop"() : () -> ()
    %cst_11 = arith.constant dense<0xFF800000> : vector<1x16xf32>
    %18 = vector.multi_reduction <maximumf>, %17, %cst_11 [2] : vector<1x16x16xf32> to vector<1x16xf32>
    %19 = vector.shape_cast %18 : vector<1x16xf32> to vector<1x16x1xf32>
    %20 = vector.broadcast %19 : vector<1x16x1xf32> to vector<1x16x16xf32>
    %21 = arith.subf %17, %20 : vector<1x16x16xf32>
    %22 = math.exp %21 : vector<1x16x16xf32>
    %cst_12 = arith.constant dense<0.000000e+00> : vector<1x16xf32>
    %23 = vector.multi_reduction <add>, %22, %cst_12 [2] : vector<1x16x16xf32> to vector<1x16xf32>
    %24 = vector.shape_cast %23 : vector<1x16xf32> to vector<1x16x1xf32>
    %25 = tpu.reciprocal %24 {approx = true} : vector<1x16x1xf32> -> vector<1x16x1xf32>
    %26 = vector.broadcast %25 : vector<1x16x1xf32> to vector<1x16x16xf32>
    %27 = arith.mulf %22, %26 : vector<1x16x16xf32>
    %28 = arith.truncf %27 : vector<1x16x16xf32> to vector<1x16x16xbf16>
    "tpu.trace_start"() <{level = 10 : i32, message = "bqk,bkd->bqd"}> : () -> ()
    %cst_13 = arith.constant dense<0.000000e+00> : vector<1x16x8xf32>
    %29 = tpu.matmul %28, %16, %cst_13 {dimension_numbers = #tpu.dot_dimension_numbers<[2], [1], [1], [2], [0, 0, 0, 1, 1, 2], [0], [0]>} : vector<1x16x16xbf16>, vector<1x16x8xbf16>, vector<1x16x8xf32> -> vector<1x16x8xf32>
    "tpu.trace_stop"() : () -> ()
    %30 = vector.shape_cast %29 : vector<1x16x8xf32> to vector<16x8xf32>
    %31 = arith.truncf %30 : vector<16x8xf32> to vector<16x8xbf16>
    %32 = vector.extract_strided_slice %9 {offsets = [0, 0], sizes = [8, 64], strides = [1, 1]} : vector<64x64xbf16> to vector<8x64xbf16>
    %cst_14 = arith.constant dense<0.000000e+00> : vector<16x64xf32>
    %33 = tpu.matmul %31, %32, %cst_14 {dimension_numbers = #tpu.dot_dimension_numbers<[1], [0], [0], [1], [0, 0, 1, 1], [], []>} : vector<16x8xbf16>, vector<8x64xbf16>, vector<16x64xf32> -> vector<16x64xf32>
    %34 = arith.addf %13, %33 : vector<16x64xf32>
    %35 = vector.extract_strided_slice %8 {offsets = [0, 0, 8], sizes = [1, 16, 8], strides = [1, 1, 1]} : vector<1x16x192xbf16> to vector<1x16x8xbf16>
    %36 = vector.extract_strided_slice %8 {offsets = [0, 0, 72], sizes = [1, 16, 8], strides = [1, 1, 1]} : vector<1x16x192xbf16> to vector<1x16x8xbf16>
    %37 = vector.extract_strided_slice %8 {offsets = [0, 0, 136], sizes = [1, 16, 8], strides = [1, 1, 1]} : vector<1x16x192xbf16> to vector<1x16x8xbf16>
    "tpu.trace_start"() <{level = 10 : i32, message = "bqd,bkd->bqk"}> : () -> ()
    %cst_15 = arith.constant dense<0.000000e+00> : vector<1x16x16xf32>
    %38 = tpu.matmul %35, %36, %cst_15 {dimension_numbers = #tpu.dot_dimension_numbers<[2], [2], [1], [1], [0, 0, 0, 1, 1, 1], [0], [0]>} : vector<1x16x8xbf16>, vector<1x16x8xbf16>, vector<1x16x16xf32> -> vector<1x16x16xf32>
    "tpu.trace_stop"() : () -> ()
    %cst_16 = arith.constant dense<0xFF800000> : vector<1x16xf32>
    %39 = vector.multi_reduction <maximumf>, %38, %cst_16 [2] : vector<1x16x16xf32> to vector<1x16xf32>
    %40 = vector.shape_cast %39 : vector<1x16xf32> to vector<1x16x1xf32>
    %41 = vector.broadcast %40 : vector<1x16x1xf32> to vector<1x16x16xf32>
    %42 = arith.subf %38, %41 : vector<1x16x16xf32>
    %43 = math.exp %42 : vector<1x16x16xf32>
    %cst_17 = arith.constant dense<0.000000e+00> : vector<1x16xf32>
    %44 = vector.multi_reduction <add>, %43, %cst_17 [2] : vector<1x16x16xf32> to vector<1x16xf32>
    %45 = vector.shape_cast %44 : vector<1x16xf32> to vector<1x16x1xf32>
    %46 = tpu.reciprocal %45 {approx = true} : vector<1x16x1xf32> -> vector<1x16x1xf32>
    %47 = vector.broadcast %46 : vector<1x16x1xf32> to vector<1x16x16xf32>
    %48 = arith.mulf %43, %47 : vector<1x16x16xf32>
    %49 = arith.truncf %48 : vector<1x16x16xf32> to vector<1x16x16xbf16>
    "tpu.trace_start"() <{level = 10 : i32, message = "bqk,bkd->bqd"}> : () -> ()
    %cst_18 = arith.constant dense<0.000000e+00> : vector<1x16x8xf32>
    %50 = tpu.matmul %49, %37, %cst_18 {dimension_numbers = #tpu.dot_dimension_numbers<[2], [1], [1], [2], [0, 0, 0, 1, 1, 2], [0], [0]>} : vector<1x16x16xbf16>, vector<1x16x8xbf16>, vector<1x16x8xf32> -> vector<1x16x8xf32>
    "tpu.trace_stop"() : () -> ()
    %51 = vector.shape_cast %50 : vector<1x16x8xf32> to vector<16x8xf32>
    %52 = arith.truncf %51 : vector<16x8xf32> to vector<16x8xbf16>
    %53 = vector.extract_strided_slice %9 {offsets = [8, 0], sizes = [8, 64], strides = [1, 1]} : vector<64x64xbf16> to vector<8x64xbf16>
    %cst_19 = arith.constant dense<0.000000e+00> : vector<16x64xf32>
    %54 = tpu.matmul %52, %53, %cst_19 {dimension_numbers = #tpu.dot_dimension_numbers<[1], [0], [0], [1], [0, 0, 1, 1], [], []>} : vector<16x8xbf16>, vector<8x64xbf16>, vector<16x64xf32> -> vector<16x64xf32>
    %55 = arith.addf %34, %54 : vector<16x64xf32>
    %56 = vector.extract_strided_slice %8 {offsets = [0, 0, 16], sizes = [1, 16, 8], strides = [1, 1, 1]} : vector<1x16x192xbf16> to vector<1x16x8xbf16>
    %57 = vector.extract_strided_slice %8 {offsets = [0, 0, 80], sizes = [1, 16, 8], strides = [1, 1, 1]} : vector<1x16x192xbf16> to vector<1x16x8xbf16>
    %58 = vector.extract_strided_slice %8 {offsets = [0, 0, 144], sizes = [1, 16, 8], strides = [1, 1, 1]} : vector<1x16x192xbf16> to vector<1x16x8xbf16>
    "tpu.trace_start"() <{level = 10 : i32, message = "bqd,bkd->bqk"}> : () -> ()
    %cst_20 = arith.constant dense<0.000000e+00> : vector<1x16x16xf32>
    %59 = tpu.matmul %56, %57, %cst_20 {dimension_numbers = #tpu.dot_dimension_numbers<[2], [2], [1], [1], [0, 0, 0, 1, 1, 1], [0], [0]>} : vector<1x16x8xbf16>, vector<1x16x8xbf16>, vector<1x16x16xf32> -> vector<1x16x16xf32>
    "tpu.trace_stop"() : () -> ()
    %cst_21 = arith.constant dense<0xFF800000> : vector<1x16xf32>
    %60 = vector.multi_reduction <maximumf>, %59, %cst_21 [2] : vector<1x16x16xf32> to vector<1x16xf32>
    %61 = vector.shape_cast %60 : vector<1x16xf32> to vector<1x16x1xf32>
    %62 = vector.broadcast %61 : vector<1x16x1xf32> to vector<1x16x16xf32>
    %63 = arith.subf %59, %62 : vector<1x16x16xf32>
    %64 = math.exp %63 : vector<1x16x16xf32>
    %cst_22 = arith.constant dense<0.000000e+00> : vector<1x16xf32>
    %65 = vector.multi_reduction <add>, %64, %cst_22 [2] : vector<1x16x16xf32> to vector<1x16xf32>
    %66 = vector.shape_cast %65 : vector<1x16xf32> to vector<1x16x1xf32>
    %67 = tpu.reciprocal %66 {approx = true} : vector<1x16x1xf32> -> vector<1x16x1xf32>
    %68 = vector.broadcast %67 : vector<1x16x1xf32> to vector<1x16x16xf32>
    %69 = arith.mulf %64, %68 : vector<1x16x16xf32>
    %70 = arith.truncf %69 : vector<1x16x16xf32> to vector<1x16x16xbf16>
    "tpu.trace_start"() <{level = 10 : i32, message = "bqk,bkd->bqd"}> : () -> ()
    %cst_23 = arith.constant dense<0.000000e+00> : vector<1x16x8xf32>
    %71 = tpu.matmul %70, %58, %cst_23 {dimension_numbers = #tpu.dot_dimension_numbers<[2], [1], [1], [2], [0, 0, 0, 1, 1, 2], [0], [0]>} : vector<1x16x16xbf16>, vector<1x16x8xbf16>, vector<1x16x8xf32> -> vector<1x16x8xf32>
    "tpu.trace_stop"() : () -> ()
    %72 = vector.shape_cast %71 : vector<1x16x8xf32> to vector<16x8xf32>
    %73 = arith.truncf %72 : vector<16x8xf32> to vector<16x8xbf16>
    %74 = vector.extract_strided_slice %9 {offsets = [16, 0], sizes = [8, 64], strides = [1, 1]} : vector<64x64xbf16> to vector<8x64xbf16>
    %cst_24 = arith.constant dense<0.000000e+00> : vector<16x64xf32>
    %75 = tpu.matmul %73, %74, %cst_24 {dimension_numbers = #tpu.dot_dimension_numbers<[1], [0], [0], [1], [0, 0, 1, 1], [], []>} : vector<16x8xbf16>, vector<8x64xbf16>, vector<16x64xf32> -> vector<16x64xf32>
    %76 = arith.addf %55, %75 : vector<16x64xf32>
    %77 = vector.extract_strided_slice %8 {offsets = [0, 0, 24], sizes = [1, 16, 8], strides = [1, 1, 1]} : vector<1x16x192xbf16> to vector<1x16x8xbf16>
    %78 = vector.extract_strided_slice %8 {offsets = [0, 0, 88], sizes = [1, 16, 8], strides = [1, 1, 1]} : vector<1x16x192xbf16> to vector<1x16x8xbf16>
    %79 = vector.extract_strided_slice %8 {offsets = [0, 0, 152], sizes = [1, 16, 8], strides = [1, 1, 1]} : vector<1x16x192xbf16> to vector<1x16x8xbf16>
    "tpu.trace_start"() <{level = 10 : i32, message = "bqd,bkd->bqk"}> : () -> ()
    %cst_25 = arith.constant dense<0.000000e+00> : vector<1x16x16xf32>
    %80 = tpu.matmul %77, %78, %cst_25 {dimension_numbers = #tpu.dot_dimension_numbers<[2], [2], [1], [1], [0, 0, 0, 1, 1, 1], [0], [0]>} : vector<1x16x8xbf16>, vector<1x16x8xbf16>, vector<1x16x16xf32> -> vector<1x16x16xf32>
    "tpu.trace_stop"() : () -> ()
    %cst_26 = arith.constant dense<0xFF800000> : vector<1x16xf32>
    %81 = vector.multi_reduction <maximumf>, %80, %cst_26 [2] : vector<1x16x16xf32> to vector<1x16xf32>
    %82 = vector.shape_cast %81 : vector<1x16xf32> to vector<1x16x1xf32>
    %83 = vector.broadcast %82 : vector<1x16x1xf32> to vector<1x16x16xf32>
    %84 = arith.subf %80, %83 : vector<1x16x16xf32>
    %85 = math.exp %84 : vector<1x16x16xf32>
    %cst_27 = arith.constant dense<0.000000e+00> : vector<1x16xf32>
    %86 = vector.multi_reduction <add>, %85, %cst_27 [2] : vector<1x16x16xf32> to vector<1x16xf32>
    %87 = vector.shape_cast %86 : vector<1x16xf32> to vector<1x16x1xf32>
    %88 = tpu.reciprocal %87 {approx = true} : vector<1x16x1xf32> -> vector<1x16x1xf32>
    %89 = vector.broadcast %88 : vector<1x16x1xf32> to vector<1x16x16xf32>
    %90 = arith.mulf %85, %89 : vector<1x16x16xf32>
    %91 = arith.truncf %90 : vector<1x16x16xf32> to vector<1x16x16xbf16>
    "tpu.trace_start"() <{level = 10 : i32, message = "bqk,bkd->bqd"}> : () -> ()
    %cst_28 = arith.constant dense<0.000000e+00> : vector<1x16x8xf32>
    %92 = tpu.matmul %91, %79, %cst_28 {dimension_numbers = #tpu.dot_dimension_numbers<[2], [1], [1], [2], [0, 0, 0, 1, 1, 2], [0], [0]>} : vector<1x16x16xbf16>, vector<1x16x8xbf16>, vector<1x16x8xf32> -> vector<1x16x8xf32>
    "tpu.trace_stop"() : () -> ()
    %93 = vector.shape_cast %92 : vector<1x16x8xf32> to vector<16x8xf32>
    %94 = arith.truncf %93 : vector<16x8xf32> to vector<16x8xbf16>
    %95 = vector.extract_strided_slice %9 {offsets = [24, 0], sizes = [8, 64], strides = [1, 1]} : vector<64x64xbf16> to vector<8x64xbf16>
    %cst_29 = arith.constant dense<0.000000e+00> : vector<16x64xf32>
    %96 = tpu.matmul %94, %95, %cst_29 {dimension_numbers = #tpu.dot_dimension_numbers<[1], [0], [0], [1], [0, 0, 1, 1], [], []>} : vector<16x8xbf16>, vector<8x64xbf16>, vector<16x64xf32> -> vector<16x64xf32>
    %97 = arith.addf %76, %96 : vector<16x64xf32>
    %98 = vector.extract_strided_slice %8 {offsets = [0, 0, 32], sizes = [1, 16, 8], strides = [1, 1, 1]} : vector<1x16x192xbf16> to vector<1x16x8xbf16>
    %99 = vector.extract_strided_slice %8 {offsets = [0, 0, 96], sizes = [1, 16, 8], strides = [1, 1, 1]} : vector<1x16x192xbf16> to vector<1x16x8xbf16>
    %100 = vector.extract_strided_slice %8 {offsets = [0, 0, 160], sizes = [1, 16, 8], strides = [1, 1, 1]} : vector<1x16x192xbf16> to vector<1x16x8xbf16>
    "tpu.trace_start"() <{level = 10 : i32, message = "bqd,bkd->bqk"}> : () -> ()
    %cst_30 = arith.constant dense<0.000000e+00> : vector<1x16x16xf32>
    %101 = tpu.matmul %98, %99, %cst_30 {dimension_numbers = #tpu.dot_dimension_numbers<[2], [2], [1], [1], [0, 0, 0, 1, 1, 1], [0], [0]>} : vector<1x16x8xbf16>, vector<1x16x8xbf16>, vector<1x16x16xf32> -> vector<1x16x16xf32>
    "tpu.trace_stop"() : () -> ()
    %cst_31 = arith.constant dense<0xFF800000> : vector<1x16xf32>
    %102 = vector.multi_reduction <maximumf>, %101, %cst_31 [2] : vector<1x16x16xf32> to vector<1x16xf32>
    %103 = vector.shape_cast %102 : vector<1x16xf32> to vector<1x16x1xf32>
    %104 = vector.broadcast %103 : vector<1x16x1xf32> to vector<1x16x16xf32>
    %105 = arith.subf %101, %104 : vector<1x16x16xf32>
    %106 = math.exp %105 : vector<1x16x16xf32>
    %cst_32 = arith.constant dense<0.000000e+00> : vector<1x16xf32>
    %107 = vector.multi_reduction <add>, %106, %cst_32 [2] : vector<1x16x16xf32> to vector<1x16xf32>
    %108 = vector.shape_cast %107 : vector<1x16xf32> to vector<1x16x1xf32>
    %109 = tpu.reciprocal %108 {approx = true} : vector<1x16x1xf32> -> vector<1x16x1xf32>
    %110 = vector.broadcast %109 : vector<1x16x1xf32> to vector<1x16x16xf32>
    %111 = arith.mulf %106, %110 : vector<1x16x16xf32>
    %112 = arith.truncf %111 : vector<1x16x16xf32> to vector<1x16x16xbf16>
    "tpu.trace_start"() <{level = 10 : i32, message = "bqk,bkd->bqd"}> : () -> ()
    %cst_33 = arith.constant dense<0.000000e+00> : vector<1x16x8xf32>
    %113 = tpu.matmul %112, %100, %cst_33 {dimension_numbers = #tpu.dot_dimension_numbers<[2], [1], [1], [2], [0, 0, 0, 1, 1, 2], [0], [0]>} : vector<1x16x16xbf16>, vector<1x16x8xbf16>, vector<1x16x8xf32> -> vector<1x16x8xf32>
    "tpu.trace_stop"() : () -> ()
    %114 = vector.shape_cast %113 : vector<1x16x8xf32> to vector<16x8xf32>
    %115 = arith.truncf %114 : vector<16x8xf32> to vector<16x8xbf16>
    %116 = vector.extract_strided_slice %9 {offsets = [32, 0], sizes = [8, 64], strides = [1, 1]} : vector<64x64xbf16> to vector<8x64xbf16>
    %cst_34 = arith.constant dense<0.000000e+00> : vector<16x64xf32>
    %117 = tpu.matmul %115, %116, %cst_34 {dimension_numbers = #tpu.dot_dimension_numbers<[1], [0], [0], [1], [0, 0, 1, 1], [], []>} : vector<16x8xbf16>, vector<8x64xbf16>, vector<16x64xf32> -> vector<16x64xf32>
    %118 = arith.addf %97, %117 : vector<16x64xf32>
    %119 = vector.extract_strided_slice %8 {offsets = [0, 0, 40], sizes = [1, 16, 8], strides = [1, 1, 1]} : vector<1x16x192xbf16> to vector<1x16x8xbf16>
    %120 = vector.extract_strided_slice %8 {offsets = [0, 0, 104], sizes = [1, 16, 8], strides = [1, 1, 1]} : vector<1x16x192xbf16> to vector<1x16x8xbf16>
    %121 = vector.extract_strided_slice %8 {offsets = [0, 0, 168], sizes = [1, 16, 8], strides = [1, 1, 1]} : vector<1x16x192xbf16> to vector<1x16x8xbf16>
    "tpu.trace_start"() <{level = 10 : i32, message = "bqd,bkd->bqk"}> : () -> ()
    %cst_35 = arith.constant dense<0.000000e+00> : vector<1x16x16xf32>
    %122 = tpu.matmul %119, %120, %cst_35 {dimension_numbers = #tpu.dot_dimension_numbers<[2], [2], [1], [1], [0, 0, 0, 1, 1, 1], [0], [0]>} : vector<1x16x8xbf16>, vector<1x16x8xbf16>, vector<1x16x16xf32> -> vector<1x16x16xf32>
    "tpu.trace_stop"() : () -> ()
    %cst_36 = arith.constant dense<0xFF800000> : vector<1x16xf32>
    %123 = vector.multi_reduction <maximumf>, %122, %cst_36 [2] : vector<1x16x16xf32> to vector<1x16xf32>
    %124 = vector.shape_cast %123 : vector<1x16xf32> to vector<1x16x1xf32>
    %125 = vector.broadcast %124 : vector<1x16x1xf32> to vector<1x16x16xf32>
    %126 = arith.subf %122, %125 : vector<1x16x16xf32>
    %127 = math.exp %126 : vector<1x16x16xf32>
    %cst_37 = arith.constant dense<0.000000e+00> : vector<1x16xf32>
    %128 = vector.multi_reduction <add>, %127, %cst_37 [2] : vector<1x16x16xf32> to vector<1x16xf32>
    %129 = vector.shape_cast %128 : vector<1x16xf32> to vector<1x16x1xf32>
    %130 = tpu.reciprocal %129 {approx = true} : vector<1x16x1xf32> -> vector<1x16x1xf32>
    %131 = vector.broadcast %130 : vector<1x16x1xf32> to vector<1x16x16xf32>
    %132 = arith.mulf %127, %131 : vector<1x16x16xf32>
    %133 = arith.truncf %132 : vector<1x16x16xf32> to vector<1x16x16xbf16>
    "tpu.trace_start"() <{level = 10 : i32, message = "bqk,bkd->bqd"}> : () -> ()
    %cst_38 = arith.constant dense<0.000000e+00> : vector<1x16x8xf32>
    %134 = tpu.matmul %133, %121, %cst_38 {dimension_numbers = #tpu.dot_dimension_numbers<[2], [1], [1], [2], [0, 0, 0, 1, 1, 2], [0], [0]>} : vector<1x16x16xbf16>, vector<1x16x8xbf16>, vector<1x16x8xf32> -> vector<1x16x8xf32>
    "tpu.trace_stop"() : () -> ()
    %135 = vector.shape_cast %134 : vector<1x16x8xf32> to vector<16x8xf32>
    %136 = arith.truncf %135 : vector<16x8xf32> to vector<16x8xbf16>
    %137 = vector.extract_strided_slice %9 {offsets = [40, 0], sizes = [8, 64], strides = [1, 1]} : vector<64x64xbf16> to vector<8x64xbf16>
    %cst_39 = arith.constant dense<0.000000e+00> : vector<16x64xf32>
    %138 = tpu.matmul %136, %137, %cst_39 {dimension_numbers = #tpu.dot_dimension_numbers<[1], [0], [0], [1], [0, 0, 1, 1], [], []>} : vector<16x8xbf16>, vector<8x64xbf16>, vector<16x64xf32> -> vector<16x64xf32>
    %139 = arith.addf %118, %138 : vector<16x64xf32>
    %140 = vector.extract_strided_slice %8 {offsets = [0, 0, 48], sizes = [1, 16, 8], strides = [1, 1, 1]} : vector<1x16x192xbf16> to vector<1x16x8xbf16>
    %141 = vector.extract_strided_slice %8 {offsets = [0, 0, 112], sizes = [1, 16, 8], strides = [1, 1, 1]} : vector<1x16x192xbf16> to vector<1x16x8xbf16>
    %142 = vector.extract_strided_slice %8 {offsets = [0, 0, 176], sizes = [1, 16, 8], strides = [1, 1, 1]} : vector<1x16x192xbf16> to vector<1x16x8xbf16>
    "tpu.trace_start"() <{level = 10 : i32, message = "bqd,bkd->bqk"}> : () -> ()
    %cst_40 = arith.constant dense<0.000000e+00> : vector<1x16x16xf32>
    %143 = tpu.matmul %140, %141, %cst_40 {dimension_numbers = #tpu.dot_dimension_numbers<[2], [2], [1], [1], [0, 0, 0, 1, 1, 1], [0], [0]>} : vector<1x16x8xbf16>, vector<1x16x8xbf16>, vector<1x16x16xf32> -> vector<1x16x16xf32>
    "tpu.trace_stop"() : () -> ()
    %cst_41 = arith.constant dense<0xFF800000> : vector<1x16xf32>
    %144 = vector.multi_reduction <maximumf>, %143, %cst_41 [2] : vector<1x16x16xf32> to vector<1x16xf32>
    %145 = vector.shape_cast %144 : vector<1x16xf32> to vector<1x16x1xf32>
    %146 = vector.broadcast %145 : vector<1x16x1xf32> to vector<1x16x16xf32>
    %147 = arith.subf %143, %146 : vector<1x16x16xf32>
    %148 = math.exp %147 : vector<1x16x16xf32>
    %cst_42 = arith.constant dense<0.000000e+00> : vector<1x16xf32>
    %149 = vector.multi_reduction <add>, %148, %cst_42 [2] : vector<1x16x16xf32> to vector<1x16xf32>
    %150 = vector.shape_cast %149 : vector<1x16xf32> to vector<1x16x1xf32>
    %151 = tpu.reciprocal %150 {approx = true} : vector<1x16x1xf32> -> vector<1x16x1xf32>
    %152 = vector.broadcast %151 : vector<1x16x1xf32> to vector<1x16x16xf32>
    %153 = arith.mulf %148, %152 : vector<1x16x16xf32>
    %154 = arith.truncf %153 : vector<1x16x16xf32> to vector<1x16x16xbf16>
    "tpu.trace_start"() <{level = 10 : i32, message = "bqk,bkd->bqd"}> : () -> ()
    %cst_43 = arith.constant dense<0.000000e+00> : vector<1x16x8xf32>
    %155 = tpu.matmul %154, %142, %cst_43 {dimension_numbers = #tpu.dot_dimension_numbers<[2], [1], [1], [2], [0, 0, 0, 1, 1, 2], [0], [0]>} : vector<1x16x16xbf16>, vector<1x16x8xbf16>, vector<1x16x8xf32> -> vector<1x16x8xf32>
    "tpu.trace_stop"() : () -> ()
    %156 = vector.shape_cast %155 : vector<1x16x8xf32> to vector<16x8xf32>
    %157 = arith.truncf %156 : vector<16x8xf32> to vector<16x8xbf16>
    %158 = vector.extract_strided_slice %9 {offsets = [48, 0], sizes = [8, 64], strides = [1, 1]} : vector<64x64xbf16> to vector<8x64xbf16>
    %cst_44 = arith.constant dense<0.000000e+00> : vector<16x64xf32>
    %159 = tpu.matmul %157, %158, %cst_44 {dimension_numbers = #tpu.dot_dimension_numbers<[1], [0], [0], [1], [0, 0, 1, 1], [], []>} : vector<16x8xbf16>, vector<8x64xbf16>, vector<16x64xf32> -> vector<16x64xf32>
    %160 = arith.addf %139, %159 : vector<16x64xf32>
    %161 = vector.extract_strided_slice %8 {offsets = [0, 0, 56], sizes = [1, 16, 8], strides = [1, 1, 1]} : vector<1x16x192xbf16> to vector<1x16x8xbf16>
    %162 = vector.extract_strided_slice %8 {offsets = [0, 0, 120], sizes = [1, 16, 8], strides = [1, 1, 1]} : vector<1x16x192xbf16> to vector<1x16x8xbf16>
    %163 = vector.extract_strided_slice %8 {offsets = [0, 0, 184], sizes = [1, 16, 8], strides = [1, 1, 1]} : vector<1x16x192xbf16> to vector<1x16x8xbf16>
    "tpu.trace_start"() <{level = 10 : i32, message = "bqd,bkd->bqk"}> : () -> ()
    %cst_45 = arith.constant dense<0.000000e+00> : vector<1x16x16xf32>
    %164 = tpu.matmul %161, %162, %cst_45 {dimension_numbers = #tpu.dot_dimension_numbers<[2], [2], [1], [1], [0, 0, 0, 1, 1, 1], [0], [0]>} : vector<1x16x8xbf16>, vector<1x16x8xbf16>, vector<1x16x16xf32> -> vector<1x16x16xf32>
    "tpu.trace_stop"() : () -> ()
    %cst_46 = arith.constant dense<0xFF800000> : vector<1x16xf32>
    %165 = vector.multi_reduction <maximumf>, %164, %cst_46 [2] : vector<1x16x16xf32> to vector<1x16xf32>
    %166 = vector.shape_cast %165 : vector<1x16xf32> to vector<1x16x1xf32>
    %167 = vector.broadcast %166 : vector<1x16x1xf32> to vector<1x16x16xf32>
    %168 = arith.subf %164, %167 : vector<1x16x16xf32>
    %169 = math.exp %168 : vector<1x16x16xf32>
    %cst_47 = arith.constant dense<0.000000e+00> : vector<1x16xf32>
    %170 = vector.multi_reduction <add>, %169, %cst_47 [2] : vector<1x16x16xf32> to vector<1x16xf32>
    %171 = vector.shape_cast %170 : vector<1x16xf32> to vector<1x16x1xf32>
    %172 = tpu.reciprocal %171 {approx = true} : vector<1x16x1xf32> -> vector<1x16x1xf32>
    %173 = vector.broadcast %172 : vector<1x16x1xf32> to vector<1x16x16xf32>
    %174 = arith.mulf %169, %173 : vector<1x16x16xf32>
    %175 = arith.truncf %174 : vector<1x16x16xf32> to vector<1x16x16xbf16>
    "tpu.trace_start"() <{level = 10 : i32, message = "bqk,bkd->bqd"}> : () -> ()
    %cst_48 = arith.constant dense<0.000000e+00> : vector<1x16x8xf32>
    %176 = tpu.matmul %175, %163, %cst_48 {dimension_numbers = #tpu.dot_dimension_numbers<[2], [1], [1], [2], [0, 0, 0, 1, 1, 2], [0], [0]>} : vector<1x16x16xbf16>, vector<1x16x8xbf16>, vector<1x16x8xf32> -> vector<1x16x8xf32>
    "tpu.trace_stop"() : () -> ()
    %177 = vector.shape_cast %176 : vector<1x16x8xf32> to vector<16x8xf32>
    %178 = arith.truncf %177 : vector<16x8xf32> to vector<16x8xbf16>
    %179 = vector.extract_strided_slice %9 {offsets = [56, 0], sizes = [8, 64], strides = [1, 1]} : vector<64x64xbf16> to vector<8x64xbf16>
    %cst_49 = arith.constant dense<0.000000e+00> : vector<16x64xf32>
    %180 = tpu.matmul %178, %179, %cst_49 {dimension_numbers = #tpu.dot_dimension_numbers<[1], [0], [0], [1], [0, 0, 1, 1], [], []>} : vector<16x8xbf16>, vector<8x64xbf16>, vector<16x64xf32> -> vector<16x64xf32>
    %181 = arith.addf %160, %180 : vector<16x64xf32>
    %c0_50 = arith.constant 0 : index
    %c0_51 = arith.constant 0 : index
    %182 = vector.load %arg6[%c0_50, %c0_51] : memref<16x64xf32, #tpu.memory_space<vmem>>, vector<16x64xf32>
    tpu.vector_store %arg6[%c0_50, %c0_51], %181 {strides = array<i32>} : memref<16x64xf32, #tpu.memory_space<vmem>>, vector<16x64xf32>,
    return
  }
  func.func @transform_0(%arg0: i32) -> (i32, i32) {
    %c0_i32 = arith.constant 0 : i32
    %c0_i32_0 = arith.constant 0 : i32
    return %arg0, %c0_i32 : i32, i32
  }
  func.func @transform_1(%arg0: i32) -> (i32, i32) {
    %c0_i32 = arith.constant 0 : i32
    %c0_i32_0 = arith.constant 0 : i32
    %c0_i32_1 = arith.constant 0 : i32
    return %c0_i32, %c0_i32_0 : i32, i32
  }
  func.func @transform_2(%arg0: i32) -> (i32, i32) {
    %c0_i32 = arith.constant 0 : i32
    %c0_i32_0 = arith.constant 0 : i32
    %c0_i32_1 = arith.constant 0 : i32
    return %c0_i32, %c0_i32_0 : i32, i32
  }
  func.func @transform_3(%arg0: i32) -> (i32, i32) {
    %c0_i32 = arith.constant 0 : i32
    %c0_i32_0 = arith.constant 0 : i32
    %c0_i32_1 = arith.constant 0 : i32
    return %c0_i32, %c0_i32_0 : i32, i32
  }
  func.func @transform_4(%arg0: i32) -> (i32, i32) {
    %c0_i32 = arith.constant 0 : i32
    %c0_i32_0 = arith.constant 0 : i32
    %c0_i32_1 = arith.constant 0 : i32
    return %c0_i32, %c0_i32_0 : i32, i32
  }
  func.func @transform_5(%arg0: i32) -> (i32, i32) {
    %c0_i32 = arith.constant 0 : i32
    %c0_i32_0 = arith.constant 0 : i32
    return %arg0, %c0_i32 : i32, i32
  }
}

</mosaic_0001>

<bundles_post_ra>
// kernel: tpu_custom_call.1
= control target key start
LH: loop header
LB: loop body
LE: loop exit
PB: predicated region body
PF: predicated region fallthrough
CT: control target
= control target key end

     0   :  { %10 = vsyncpa [#allocation3], 0  ;;  %s2185_s0 = inlined_call_operand.hbm [shape: f32[32,64], index: 0, kind: input, shape index: {}]   ;;  %s2186_s1 = inlined_call_operand.hbm [shape: bf16[64,192], index: 1, kind: input, shape index: {}]   ;;  %s2187_s2 = inlined_call_operand.hbm [shape: f32[1,192], index: 2, kind: input, shape index: {}]   ;;  %s2188_s3 = inlined_call_operand.hbm [shape: bf16[64,64], index: 3, kind: input, shape index: {}]   ;;  %s2189_s4 = inlined_call_operand.vmem [shape: f32[1,64], index: 4, kind: input, shape index: {}]   ;;  %s2190_s5 = inlined_call_operand.hbm [shape: f32[32,64], index: 5, kind: output, shape index: {}]  }
   0x1   :  { %12 = vsyncpa [#allocation3 + $0x1], 0 }
   0x2   :  { %13 = vsyncpa [#allocation6], 0 }
   0x3   :  { %14 = vsyncpa [#allocation9], 0 }
   0x4   :  { %15 = vsyncpa [#allocation4], 0 }
   0x5   :  { %17 = vsyncpa [#allocation4 + $0x1], 0  ;;  %s1845_s18 = smov 0   ;;  %s1847_s19 = smov 0  }
   0x6   :  { %s1849_s20 = smov 0   ;;  %s1851_s21 = smov 0  }
   0x7 LB: > { %s1866_s22 = sadd.s32 4294967295, %s1790_s21   ;;  %s1346_s23 = sadd.s32 4294967294, %s1790_s21   ;;  %s1790_s21 = sphi %s1851_s21, %s2203_s21   ;;  %s1786_s20 = sphi %s1849_s20, %s2202_s20   ;;  %s1782_s19 = sphi %s1847_s19, %s2201_s19   ;;  %s1778_s18 = sphi %s1845_s18, %s2200_s18  }
   0x8   : > { %p43_p0 = scmp.ne.s32.totalorder %s1782_s19, %s1778_s18  ;;  %p44_p1 = scmp.eq.s32.totalorder %s1866_s22, 0 }
   0x9   : > { %p151_p2 = scmp.eq.s32.totalorder %s1866_s22, 1  ;;  %p157_p3 = scmp.eq.s32.totalorder %s1346_s23, 1 }
   0xa   : > { %p1875_p4 = por %p44_p1, %p43_p0  ;;  %p1347_p5 = scmp.ge.s32.totalorder %s1790_s21, 1 }
   0xb   : > { %p1880_p6 = por %p157_p3, %p43_p0  ;;  %p164_p7 = scmp.lt.s32.totalorder %s1790_s21, 3 }
   0xc   : > { %s175_s28 = sshll.u32 %s2186_s1, 4  ;;  %s1792_s30 = smov [#allocation5]   ;;  %s176_s28 = int_to_ptr.hbm [resolvable:$true] %s175_s28 }
   0xd   : > { %p1888_p8 = pnand %p1347_p5, %p164_p7  ;;  %s177_s6 = sshll.u32 %s1792_s30, 4  ;;  %s178_s6 = int_to_ptr.vmem [resolvable:$true] %s177_s6 }
   0xe   : > { %s190_s10 = sshll.u32 %s2187_s2, 4  ;;  %s2191_s11 = smov 128   ;;  %s191_s10 = int_to_ptr.hbm [resolvable:$true] %s190_s10 }
   0xf   : > { %p1450_p9 = pneg %p1888_p8  ;;  %s1794_s12 = smov 8  }
  0x10   : > { %s1795_s13 = smov [#allocation7]   ;;  %s201_s17 = sshll.u32 %s2188_s3, 4  ;;  %s202_s17 = int_to_ptr.hbm [resolvable:$true] %s201_s17 }
  0x11   : > { %p1896_p10 = pnand %p1450_p9, %p44_p1  ;;  %s192_s14 = sshll.u32 %s1795_s13, 4  ;;  %s193_s14 = int_to_ptr.vmem [resolvable:$true] %s192_s14 }
  0x12   : > { %s1796_s23 = smov [#allocation8]   ;;  %s1797_s27 = smov 64  }
  0x13   : > { %1453 = dma.hbm_to_vmem [thread:$0]  (!%p1896_p10), %s176_s28, 1024, %s178_s6, [#allocation6], %s2191_s11, %s2191_s11, %s1794_s12  }
  0x14   : > { %1456 = dma.hbm_to_vmem [thread:$0]  (!%p1896_p10), %s191_s10, 32, %s193_s14, [#allocation6]  }
  0x15   : > { %s203_s26 = sshll.u32 %s1796_s23, 4  ;;  %s1798_s28 = smov 4   ;;  %s204_s26 = int_to_ptr.vmem [resolvable:$true] %s203_s26 }
  0x16   : > { %1459 = dma.hbm_to_vmem [thread:$0]  (!%p1896_p10), %s202_s17, 512, %s204_s26, [#allocation9], %s1797_s27, %s1797_s27, %s1798_s28  }
  0x17   : > { %s1917_s30 = sadd.s32 1, %s1790_s21   ;;  %s30_s8 = sadd.s32 1, %s1786_s20 }
  0x18   : > { %s27_s6 = ssub.s32 %s1790_s21, %s1917_s30  ;;  %p37_p13 = scmp.ne.s32.totalorder %s1786_s20, %s1782_s19 }
  0x19   : > { %p28_p12 = scmp.eq.s32.totalorder %s27_s6, 0  ;;  %p38_p0 = scmp.eq.s32.totalorder %s1790_s21, 0 }
  0x1a   : > { %p1930_p3 = por %p151_p2, %p37_p13  ;;  %p1471_p5 = scmp.lt.s32.totalorder %s1790_s21, 2 }
  0x1b   : > { %s1926_s9 = scalar_select %p28_p12, %s1786_s20, %s30_s8  }
  0x1c   : > { %s220_s13 = sand.u32 1, %s1786_s20   ;;  %s1424_s14 = sshll.u32 %s1790_s21, 4 }
  0x1d   : > { %p39_p7 = por %p38_p0, %p37_p13  ;;  %s1352_s7 = sshll.u32 %s220_s13, 4 }
  0x1e   : > { %s229_s17 = scalar_lea.hbm %s2185_s0, %s1424_s14  ;;  %s224_s26 = scalar_lea.vmem [#allocation2], %s1352_s7 }
  0x1f   : > { %s230_s23 = sshll.u32 %s229_s17, 4  ;;  %s232_s27 = sshll.u32 %s224_s26, 4  ;;  %s231_s23 = int_to_ptr.hbm [resolvable:$true] %s230_s23  ;;  %s233_s27 = int_to_ptr.vmem [resolvable:$true] %s232_s27 }
  0x20   : > { %p1940_p9 = pnand %p1471_p5, %p39_p7  ;;  %s221_s6 = scalar_lea.sflag [#allocation3], %s220_s13 }
  0x21   : > { %s1686_s8 = sshra.s32 %s231_s23, 4  ;;  %s1693_s7 = scalar_lea.hbm %s2185_s0, 32  ;;  %s1687_s8 = int_to_ptr.hbm [resolvable:$true] %s1686_s8 }
  0x22   : > { %s1688_s11 = scalar_lea.hbm %s1687_s8, 16  ;;  %p1690_p10 = pneg %p1940_p9 }
  0x23   : > { %p1689_p2 = scmp.ne.s32.totalorder %s1687_s8, %s1688_s11  ;;  %p1694_p0 = scmp.lt.s32.totalorder %s1687_s8, %s2185_s0 }
  0x24   : > { %p1695_p5 = scmp.lt.s32.totalorder %s1693_s7, %s1688_s11 }
  0x25   : > { %p1691_p12 = pnand %p1690_p10, %p1689_p2 }
  0x26   : > { %p1696_p7 = por %p1695_p5, %p1694_p0 }
  0x27   : > { %p1692_p13 = pneg %p1691_p12 }
  0x29   : > { %p1697_p11 = pnand %p1696_p7, %p1692_p13 }
  0x2b   : > { %1700 = shalt.err (!%p1697_p11)
}
  0x2c   : > { %s2198_s13 = smov 128   ;;  %244 = sbr.rel (%p1888_p8) target bundleno = 2734 (0xaae), region = 40 }
  0x2d   : > { %1463 = dma.hbm_to_vmem [thread:$0]  (!%p1940_p9), %s231_s23, 256, %s233_s27, %s221_s6, %s2198_s13, %s2198_s13, %s1794_s12  }
  0x2e   : > { %s1960_s26 = sand.u32 (!%p1888_p8), 1, %s1782_s19  }
  0x2f   : > { %s1356_s11 = sshll.u32 (!%p1888_p8), %s1960_s26, 4  ;;  %s247_s8 = scalar_lea.sflag (!%p1888_p8), [#allocation3], %s1960_s26 }
  0x30   : > { %s1966_s14 = scalar_lea.vmem (!%p1888_p8), [#allocation2], %s1356_s11 }
  0x31   : > { %1761 = dma.done.wait (%p1875_p4), %s247_s8, 256  }
  0x32   : > { %1763 = vsyncadd (%p1875_p4), %s247_s8, 4294967040 }
  0x33   : > { %1765 = dma.done.wait (%p44_p1), [#allocation6], 1056  }
  0x34   : > { %1767 = vsyncadd (%p44_p1), [#allocation6], 4294966240 }
  0x35   : > { %1769 = dma.done.wait (%p44_p1), [#allocation9], 512  }
  0x36   : > { %1771 = vsyncadd (%p44_p1), [#allocation9], 4294966784  ;;  %v1387_v0 = vld [vmem:[#allocation5 + $0x30] sm:$0xf]  ;;  %v1432_v1 = vld [vmem:[#allocation5 + $0x34] sm:$0xf0] }
  0x37   : > { %v1431_v2 = vld [vmem:[#allocation5 + $0x34] sm:$0xf]  ;;  %v1388_v3 = vor.u32 %v1432_v1, %v1387_v0  ;;  %v1389_v4 = vld [vmem:[#allocation5 + $0x38] sm:$0xf0]  ;;  %v1379_v5 = vld [vmem:[#allocation5 + $0x20] sm:$0xf] }
  0x38   : > { %v1430_v6 = vld [vmem:[#allocation5 + $0x24] sm:$0xf0]  ;;  %v1392_v7 = vor.u32 %v1431_v2, %v1389_v4  ;;  %v1429_v8 = vld [vmem:[#allocation5 + $0x24] sm:$0xf]  ;;  %v1381_v9 = vld [vmem:[#allocation5 + $0x28] sm:$0xf0] }
  0x39   : > { %361 = vmatpush.bf16.msra.mxu0 %v1388_v3  ;;  %v1380_v10 = vor.u32 %v1430_v6, %v1379_v5  ;;  %v1384_v11 = vor.u32 %v1429_v8, %v1381_v9  ;;  %v1371_v12 = vld [vmem:[#allocation5 + $0x10] sm:$0xf]  ;;  %v1428_v13 = vld [vmem:[#allocation5 + $0x14] sm:$0xf0]  ;;  %v1427_v14 = vld [vmem:[#allocation5 + $0x14] sm:$0xf] }
  0x3a   : > { %375 = vmatpush.bf16.msra.mxu1 %v1392_v7  ;;  %v1373_v15 = vld [vmem:[#allocation5 + $0x18] sm:$0xf0]  ;;  %v1372_v16 = vor.u32 %v1428_v13, %v1371_v12  ;;  %v1363_v18 = vld [vmem:[#allocation5] sm:$0xf]  ;;  %v1426_v19 = vld [vmem:[#allocation5 + $0x4] sm:$0xf0] }
  0x3b   : > { %v1376_v17 = vor.u32 %v1427_v14, %v1373_v15  ;;  %v1425_v20 = vld [vmem:[#allocation5 + $0x4] sm:$0xf]  ;;  %v1365_v21 = vld [vmem:[#allocation5 + $0x8] sm:$0xf0]  ;;  %v1364_v22 = vor.u32 %v1426_v19, %v1363_v18  ;;  %vm353_vm0 = vcmask 523264   ;;  %s1799_s24 = smov 120  }
  0x3c   : > { %v296_v23 = vld [vmem:[%s1966_s14] sm:$0xff]  ;;  %v297_v24 = vld [vmem:[%s1966_s14 + $0x8] sm:$0xff]  ;;  %v1368_v25 = vor.u32 %v1425_v20, %v1365_v21  ;;  %s1800_s29 = smov 64   ;;  %s1801_s12 = smov 56   ;;  %vm407_vm1 = vcmask 64512   ;;  %vm428_vm2 = vcmask 130048  }
  0x3d   : > { %362 = vmatpush.bf16.msra.mxu0 %v1380_v10  ;;  %v298_v26 = vpack.c.bf16 %v297_v24, %v296_v23  ;;  %v307_v27 = vld [vmem:[#allocation7] sm:$0x3]  ;;  %s1802_s23 = smov 112   ;;  %s1803_s27 = smov 48   ;;  %vm485_vm3 = vcmask 1043456  }
  0x3e   : > { %376 = vmatpush.bf16.msra.mxu1 %v1384_v11  ;;  %v309_v28 = vperm.slane %v307_v27, 0  ;;  %v310_v30 = vperm.slane %v307_v27, 1  ;;  %s1804_s28 = smov 104   ;;  %s1805_s6 = smov 40   ;;  %v388_v21 = vld [vmem:[#allocation8 + $0x4] sm:$0xf] }
  0x3f   : > { %v590_v23 = vsel %vm485_vm3, %v388_v21, 0  ;;  %s1806_s16 = smov 24   ;;  %s1807_s17 = smov 96  }
  0x40   : > { %s1808_s13 = smov 32   ;;  %s1809_s8 = smov 88  }
  0x41   : > { %363 = vmatpush.bf16.msra.mxu0 %v1372_v16  ;;  %s1810_s14 = smov 80  }
  0x42   : > { %377 = vmatpush.bf16.msra.mxu1 %v1376_v17  ;;  %v387_v17 = vld [vmem:[#allocation8] sm:$0xf] }
  0x43   : > { %v487_v18 = vsel %vm485_vm3, %v387_v17, 0 }
  0x45   : > { %364 = vmatpush.bf16.msra.mxu0 %v1364_v22 }
  0x46   : > { %378 = vmatpush.bf16.msra.mxu1 %v1368_v25 }
  0x48   : > { %1393 = vmatmul.msk.bf16.vlgmr.msra.gmra.mxu0 %vm353_vm0, %v298_v26 }
  0x49   : > { %1394 = vmatmul.msk.bf16.vlgmr.msra.gmra.mxu1 %vm353_vm0, %v298_v26 }
  0x4a   : > { %599 = vmatpush.bf16.msrb.mxu1 %v590_v23 }
  0xc5   : > { %v366_v29 = vpop.f32.mrf.mxu0 }
  0xc6   : > { %v380_v31 = vpop.f32.mrf.mxu1  ;;  %v367_v32 = vadd.f32 %v366_v29, %v309_v28 }
  0xc7   : > { %v381_v33 = vadd.f32 %v380_v31, %v310_v30 }
  0xc9   : > { %v1984_v34 = vpack.c.bf16 %v381_v33, %v367_v32 }
  0xcb   : > { %v453_v40 = vrot.slane %v1984_v34, 4  ;;  %v402_v41 = vunpack.c.l.b16 %v1984_v34 }
  0xcd   : > { %v368_v35 = vpop.f32.mrf.mxu0  ;;  %v460_v45 = vunpack.c.l.b16 %v453_v40 }
  0xce   : > { %v369_v36 = vadd.f32 %v368_v35, %v309_v28  ;;  %v382_v37 = vpop.f32.mrf.mxu1 }
  0xcf   : > { %v383_v38 = vadd.f32 %v382_v37, %v310_v30 }
  0xd1   : > { %v1986_v39 = vpack.c.bf16 %v383_v38, %v369_v36 }
  0xd3   : > { %v403_v42 = vunpack.c.l.b16 %v1986_v39  ;;  %v454_v43 = vrot.slane %v1986_v39, 4 }
  0xd5   : > { %v1992_v44 = vpack.c.b16 %v403_v42, %v402_v41  ;;  %v461_v46 = vunpack.c.l.b16 %v454_v43 }
  0xd7   : > { %505 = vrot.lane.b32.xlu1 %v1992_v44, %s1799_s24  ;;  %405 = vrot.lane.b32.xlu0 %v1992_v44, %s1800_s29  ;;  %v462_v47 = vpack.c.b16 %v461_v46, %v460_v45  ;;  %s1812_s29 = smov 8  }
  0xd9   : > { %474 = vmatpush.bf16.msra.mxu3 %v462_v47 }
  0xdd   : > { %496 = vmatpush.bf16.msrb.mxu3 %v487_v18 }
  0xdf   : > { %507 = vrot.lane.b32.xlu0 %v1992_v44, %s1801_s12  ;;  %s1813_s12 = smov 72  }
 0x149   : > { %v406_v48 = vpop.permute.xlu0 %405  ;;  %v506_v52 = vpop.permute.xlu1 %505 }
 0x14a   : > { %v412_v49 = vsel %vm407_vm1, %v406_v48, 0 }
 0x14b   : > { %421 = vmatpush.bf16.xpose.msra.mxu2 %v412_v49 }
 0x151   : > { %v508_v50 = vpop.permute.xlu0 %507 }
 0x152   : > { %1395 = vmatmul.msk.bf16.vlgmr.msra.gmra.mxu2 %vm407_vm1, %v1992_v44  ;;  %v513_v51 = vsel %vm407_vm1, %v508_v50, 0 }
 0x153   : > { %522 = vmatpush.bf16.xpose.msrb.mxu2 %v513_v51 }
 0x162   : > { %1398 = vmatmul.msk.bf16.vlgmr.msrb.gmra.mxu2 %vm407_vm1, %v506_v52 }
 0x1d5   : > { %v423_v53 = vpop.f32.mrf.mxu2 }
 0x1d6   : > { %v429_v54 = vsel %vm428_vm2, %v423_v53, -inf }
 0x1d7   : > { %430 = vmax.xlane.f32.xlu1 %v429_v54 }
 0x1dd   : > { %v425_v55 = vpop.f32.mrf.mxu2 }
 0x1de   : > { %v432_v56 = vsel %vm428_vm2, %v425_v55, -inf }
 0x1df   : > { %433 = vmax.xlane.f32.xlu2 %v432_v56 }
 0x1e5   : > { %v524_v57 = vpop.f32.mrf.mxu2 }
 0x1e6   : > { %v529_v58 = vsel %vm428_vm2, %v524_v57, -inf }
 0x1e7   : > { %530 = vmax.xlane.f32.xlu2 %v529_v58 }
 0x1ed   : > { %v526_v59 = vpop.f32.mrf.mxu2 }
 0x1ee   : > { %v532_v60 = vsel %vm428_vm2, %v526_v59, -inf }
 0x1ef   : > { %533 = vmax.xlane.f32.xlu0 %v532_v60 }
 0x1f0   : > { %555 = vrot.lane.b32.xlu1 %v1986_v39, %s1799_s24 }
 0x1f8   : > { %608 = vrot.lane.b32.xlu1 %v1992_v44, %s1802_s23 }
 0x203   : > { %610 = vrot.lane.b32.xlu0 %v1992_v44, %s1803_s27  ;;  %s292_s27 = scalar_lea.vmem [#allocation10], %s1356_s11 }
 0x204   : > { %s1241_s7 = sshll.u32 %s292_s27, 4  ;;  %s1242_s7 = int_to_ptr.vmem [resolvable:$true] %s1241_s7 }
 0x20b   : > { %711 = vrot.lane.b32.xlu0 %v1992_v44, %s1804_s28 }
 0x24a   : > { %v431_v61 = vpop.xlane.xlu1 %430 }
 0x24b   : > { %v435_v62 = vsub.f32 %v423_v53, %v431_v61 }
 0x24d   : > { %v437_v63 = vmul.f32 1.442695, %v435_v62 }
 0x24f   : > { %1532 = vpow2.f32 %v437_v63 }
 0x252   : > { %v434_v0 = vpop.xlane.xlu2 %433 }
 0x253   : > { %v436_v1 = vsub.f32 %v425_v55, %v434_v0 }
 0x255   : > { %v1533_v2 = vpop.eup %1532  ;;  %v439_v3 = vmul.f32 1.442695, %v436_v1 }
 0x256   : > { %v441_v4 = vsel %vm428_vm2, %v1533_v2, 0.0 }
 0x257   : > { %1534 = vpow2.f32 %v439_v3  ;;  %442 = vadd.xlane.f32.xlu2 %v441_v4 }
 0x25a   : > { %v531_v5 = vpop.xlane.xlu2 %530 }
 0x25b   : > { %v535_v6 = vsub.f32 %v524_v57, %v531_v5 }
 0x25d   : > { %v1535_v7 = vpop.eup %1534  ;;  %v537_v8 = vmul.f32 1.442695, %v535_v6 }
 0x25e   : > { %v444_v9 = vsel %vm428_vm2, %v1535_v7, 0.0 }
 0x25f   : > { %1536 = vpow2.f32 %v537_v8  ;;  %445 = vadd.xlane.f32.xlu2 %v444_v9 }
 0x262   : > { %v534_v10 = vpop.xlane.xlu0 %533  ;;  %v556_v38 = vpop.permute.xlu1 %555 }
 0x263   : > { %v536_v11 = vsub.f32 %v526_v59, %v534_v10  ;;  %v558_v42 = vrot.slane %v556_v38, 4 }
 0x265   : > { %v1537_v12 = vpop.eup %1536  ;;  %v539_v13 = vmul.f32 1.442695, %v536_v11  ;;  %v565_v49 = vunpack.c.l.b16 %v558_v42 }
 0x266   : > { %v541_v14 = vsel %vm428_vm2, %v1537_v12, 0.0 }
 0x267   : > { %1538 = vpow2.f32 %v539_v13  ;;  %542 = vadd.xlane.f32.xlu2 %v541_v14 }
 0x26a   : > { %v609_v63 = vpop.permute.xlu1 %608 }
 0x26d   : > { %v1539_v15 = vpop.eup %1538 }
 0x26e   : > { %v544_v16 = vsel %vm428_vm2, %v1539_v15, 0.0 }
 0x26f   : > { %545 = vadd.xlane.f32.xlu2 %v544_v16 }
 0x275   : > { %v611_v32 = vpop.permute.xlu0 %610 }
 0x276   : > { %v616_v35 = vsel %vm407_vm1, %v611_v32, 0 }
 0x27d   : > { %v712_v0 = vpop.permute.xlu0 %711 }
 0x287   : > { %553 = vrot.lane.b32.xlu2 %v1984_v34, %s1799_s24  ;;  %s1811_s24 = smov 16  }
 0x28f   : > { %713 = vrot.lane.b32.xlu2 %v1992_v44, %s1805_s6 }
 0x2ca   : > { %v443_v19 = vpop.xlane.xlu2 %442 }
 0x2cb   : > { %1540 = vrcp.f32 %v443_v19 }
 0x2d1   : > { %v1541_v22 = vpop.eup %1540 }
 0x2d2   : > { %v446_v20 = vpop.xlane.xlu2 %445  ;;  %v449_v24 = vmul.f32 %v1541_v22, %v1533_v2  ;;  %v1531_v2 = vld [vmem:[%s2189_s4] ss:$0 sm:$0xff] }
 0x2d3   : > { %1542 = vrcp.f32 %v446_v20 }
 0x2d4   : > { %v451_v28 = vpack.c.bf16 %v449_v24, %v449_v24 }
 0x2d6   : > { %v457_v30 = vunpack.c.l.b16 %v451_v28 }
 0x2d9   : > { %v1543_v25 = vpop.eup %1542 }
 0x2da   : > { %v543_v26 = vpop.xlane.xlu2 %542  ;;  %v450_v27 = vmul.f32 %v1543_v25, %v1535_v7 }
 0x2db   : > { %1544 = vrcp.f32 %v543_v26 }
 0x2dc   : > { %v452_v29 = vpack.c.bf16 %v450_v27, %v450_v27 }
 0x2de   : > { %v458_v31 = vunpack.c.l.b16 %v452_v29 }
 0x2e0   : > { %v459_v33 = vpack.c.b16 %v458_v31, %v457_v30 }
 0x2e1   : > { %v1545_v37 = vpop.eup %1544 }
 0x2e2   : > { %1396 = vmatmul.msk.bf16.vlgmr.msra.gmra.mxu3 %vm428_vm2, %v459_v33  ;;  %v546_v36 = vpop.xlane.xlu2 %545  ;;  %v549_v40 = vmul.f32 %v1545_v37, %v1537_v12 }
 0x2e3   : > { %1546 = vrcp.f32 %v546_v36  ;;  %625 = vmatpush.bf16.xpose.msra.mxu3 %v616_v35 }
 0x2e4   : > { %v551_v47 = vpack.c.bf16 %v549_v40, %v549_v40 }
 0x2e6   : > { %v561_v53 = vunpack.c.l.b16 %v551_v47  ;;  %v389_v47 = vld [vmem:[#allocation8 + $0x8] sm:$0xf] }
 0x2e9   : > { %v1547_v41 = vpop.eup %1546 }
 0x2ea   : > { %v550_v43 = vmul.f32 %v1547_v41, %v1539_v15  ;;  %v554_v45 = vpop.permute.xlu2 %553 }
 0x2eb   : > { %v557_v46 = vrot.slane %v554_v45, 4 }
 0x2ec   : > { %v552_v48 = vpack.c.bf16 %v550_v43, %v550_v43 }
 0x2ed   : > { %v564_v50 = vunpack.c.l.b16 %v557_v46 }
 0x2ee   : > { %v562_v51 = vunpack.c.l.b16 %v552_v48  ;;  %v693_v48 = vsel %vm485_vm3, %v389_v47, 0 }
 0x2ef   : > { %v566_v52 = vpack.c.b16 %v565_v49, %v564_v50 }
 0x2f0   : > { %v563_v55 = vpack.c.b16 %v562_v51, %v561_v53 }
 0x2f1   : > { %578 = vmatpush.bf16.msrb.mxu0 %v566_v52 }
 0x2f2   : > { %v714_v54 = vpop.permute.xlu2 %713 }
 0x2f3   : > { %v719_v56 = vsel %vm407_vm1, %v714_v54, 0 }
 0x2f4   : > { %1399 = vmatmul.msk.bf16.vlgmr.msrb.gmra.mxu0 %vm428_vm2, %v563_v55  ;;  %728 = vmatpush.bf16.xpose.msra.mxu1 %v719_v56 }
 0x2f5   : > { %702 = vmatpush.bf16.msra.mxu0 %v693_v48 }
 0x365   : > { %v476_v57 = vpop.f32.mrf.mxu3 }
 0x36d   : > { %v478_v58 = vpop.f32.mrf.mxu3 }
 0x36e   : > { %v481_v59 = vpack.c.bf16 %v478_v58, %v476_v57 }
 0x370   : > { %1397 = vmatmul.msk.bf16.vlgmr.msrb.gmra.mxu3 %vm407_vm1, %v481_v59 }
 0x371   : > { %v580_v60 = vpop.f32.mrf.mxu0 }
 0x379   : > { %v582_v61 = vpop.f32.mrf.mxu0 }
 0x37a   : > { %v585_v62 = vpack.c.bf16 %v582_v61, %v580_v60 }
 0x37c   : > { %1400 = vmatmul.msk.bf16.vlgmr.msrb.gmra.mxu1 %vm407_vm1, %v585_v62 }
 0x380   : > { %1401 = vmatmul.msk.bf16.vlgmr.msra.gmra.mxu3 %vm407_vm1, %v609_v63 }
 0x38c   : > { %1404 = vmatmul.msk.bf16.vlgmr.msra.gmra.mxu1 %vm407_vm1, %v712_v0 }
 0x3f3   : > { %v498_v1 = vpop.f32.mrf.mxu3 }
 0x3f4   : > { %v503_v3 = vadd.f32 %v1531_v2, %v498_v1 }
 0x3f9   : > { %v601_v4 = vpop.f32.mrf.mxu1 }
 0x3fa   : > { %v2034_v5 = vadd.f32 %v601_v4, %v503_v3 }
 0x3fb   : > { %v500_v6 = vpop.f32.mrf.mxu3 }
 0x3fc   : > { %v504_v7 = vadd.f32 %v1531_v2, %v500_v6 }
 0x401   : > { %v603_v8 = vpop.f32.mrf.mxu1 }
 0x402   : > { %v2036_v9 = vadd.f32 %v603_v8, %v504_v7 }
 0x403   : > { %v627_v10 = vpop.f32.mrf.mxu3 }
 0x404   : > { %v632_v11 = vsel %vm428_vm2, %v627_v10, -inf }
 0x405   : > { %633 = vmax.xlane.f32.xlu0 %v632_v11  ;;  %v390_v11 = vld [vmem:[#allocation8 + $0xc] sm:$0xf] }
 0x409   : > { %v730_v12 = vpop.f32.mrf.mxu1 }
 0x40a   : > { %v735_v13 = vsel %vm428_vm2, %v730_v12, -inf }
 0x40b   : > { %736 = vmax.xlane.f32.xlu2 %v735_v13  ;;  %v629_v14 = vpop.f32.mrf.mxu3 }
 0x40c   : > { %v635_v16 = vsel %vm428_vm2, %v629_v14, -inf }
 0x411   : > { %v732_v15 = vpop.f32.mrf.mxu1 }
 0x412   : > { %v738_v17 = vsel %vm428_vm2, %v732_v15, -inf }
 0x413   : > { %636 = vmax.xlane.f32.xlu2 %v635_v16  ;;  %739 = vmax.xlane.f32.xlu1 %v738_v17 }
 0x419   : > { %759 = vrot.lane.b32.xlu0 %v1984_v34, %s1804_s28 }
 0x478   : > { %v634_v18 = vpop.xlane.xlu0 %633 }
 0x479   : > { %v638_v19 = vsub.f32 %v627_v10, %v634_v18  ;;  %v796_v18 = vsel %vm485_vm3, %v390_v11, 0 }
 0x47b   : > { %v640_v20 = vmul.f32 1.442695, %v638_v19 }
 0x47d   : > { %1548 = vpow2.f32 %v640_v20 }
 0x47e   : > { %v737_v21 = vpop.xlane.xlu2 %736 }
 0x47f   : > { %v741_v22 = vsub.f32 %v730_v12, %v737_v21 }
 0x481   : > { %v743_v23 = vmul.f32 1.442695, %v741_v22 }
 0x483   : > { %v2044_v24 = vpop.eup %1548  ;;  %1550 = vpow2.f32 %v743_v23 }
 0x484   : > { %v644_v25 = vsel %vm428_vm2, %v2044_v24, 0.0 }
 0x485   : > { %645 = vadd.xlane.f32.xlu2 %v644_v25 }
 0x486   : > { %v637_v26 = vpop.xlane.xlu2 %636  ;;  %v740_v27 = vpop.xlane.xlu1 %739 }
 0x487   : > { %v639_v28 = vsub.f32 %v629_v14, %v637_v26  ;;  %v742_v29 = vsub.f32 %v732_v15, %v740_v27 }
 0x489   : > { %v1551_v30 = vpop.eup %1550  ;;  %v642_v31 = vmul.f32 1.442695, %v639_v28  ;;  %v745_v32 = vmul.f32 1.442695, %v742_v29 }
 0x48a   : > { %v747_v33 = vsel %vm428_vm2, %v1551_v30, 0.0 }
 0x48b   : > { %1552 = vpow2.f32 %v642_v31  ;;  %748 = vadd.xlane.f32.xlu1 %v747_v33  ;;  %v760_v41 = vpop.permute.xlu0 %759 }
 0x48c   : > { %1554 = vpow2.f32 %v745_v32  ;;  %v763_v42 = vrot.slane %v760_v41, 4 }
 0x48e   : > { %v770_v49 = vunpack.c.l.b16 %v763_v42 }
 0x491   : > { %v1553_v35 = vpop.eup %1552 }
 0x492   : > { %v1555_v36 = vpop.eup %1554  ;;  %v647_v37 = vsel %vm428_vm2, %v1553_v35, 0.0 }
 0x493   : > { %648 = vadd.xlane.f32.xlu1 %v647_v37  ;;  %v750_v38 = vsel %vm428_vm2, %v1555_v36, 0.0 }
 0x494   : > { %751 = vadd.xlane.f32.xlu0 %v750_v38 }
 0x49d   : > { %761 = vrot.lane.b32.xlu2 %v1986_v39, %s1804_s28 }
 0x4a5   : > { %919 = vrot.lane.b32.xlu2 %v1992_v44, %s1806_s16 }
 0x4a8   : > { %658 = vrot.lane.b32.xlu0 %v1986_v39, %s1802_s23 }
 0x4ac   : > { %656 = vrot.lane.b32.xlu1 %v1984_v34, %s1802_s23  ;;  %s1433_s23 = sshll.u32 %s1866_s22, 4  ;;  %s1229_s22 = scalar_lea.sflag [#allocation4], %s1960_s26 }
 0x4ad   : > { %814 = vrot.lane.b32.xlu2 %v1992_v44, %s1807_s17  ;;  %s1240_s15 = scalar_lea.hbm %s2190_s5, %s1433_s23 }
 0x4ae   : > { %s1243_s16 = sshll.u32 %s1240_s15, 4  ;;  %s1244_s16 = int_to_ptr.hbm [resolvable:$true] %s1243_s16 }
 0x4af   : > { %s1730_s11 = sshra.s32 %s1244_s16, 4  ;;  %s1731_s11 = int_to_ptr.hbm [resolvable:$true] %s1730_s11 }
 0x4b0   : > { %816 = vrot.lane.b32.xlu0 %v1992_v44, %s1808_s13  ;;  %p1737_p11 = scmp.lt.s32.totalorder %s1731_s11, %s2190_s5 }
 0x4b4   : > { %917 = vrot.lane.b32.xlu1 %v1992_v44, %s1809_s8 }
 0x4f8   : > { %v646_v40 = vpop.xlane.xlu2 %645 }
 0x4fe   : > { %v749_v43 = vpop.xlane.xlu1 %748 }
 0x4ff   : > { %1556 = vrcp.f32 %v749_v43 }
 0x500   : > { %v762_v45 = vpop.permute.xlu2 %761 }
 0x501   : > { %v764_v46 = vrot.slane %v762_v45, 4 }
 0x503   : > { %v771_v50 = vunpack.c.l.b16 %v764_v46 }
 0x505   : > { %v772_v51 = vpack.c.b16 %v771_v50, %v770_v49  ;;  %v1557_v53 = vpop.eup %1556 }
 0x506   : > { %v755_v54 = vmul.f32 %v1557_v53, %v1551_v30  ;;  %v649_v56 = vpop.xlane.xlu1 %648 }
 0x507   : > { %v752_v52 = vpop.xlane.xlu0 %751  ;;  %784 = vmatpush.bf16.msrb.mxu3 %v772_v51 }
 0x508   : > { %1558 = vrcp.f32 %v752_v52  ;;  %v757_v57 = vpack.c.bf16 %v755_v54, %v755_v54  ;;  %v920_v20 = vpop.permute.xlu2 %919 }
 0x509   : > { %1560 = vrcp.f32 %v649_v56  ;;  %v925_v22 = vsel %vm407_vm1, %v920_v20, 0 }
 0x50a   : > { %1562 = vrcp.f32 %v646_v40  ;;  %v767_v60 = vunpack.c.l.b16 %v757_v57 }
 0x50e   : > { %v1559_v55 = vpop.eup %1558 }
 0x50f   : > { %v756_v58 = vmul.f32 %v1559_v55, %v1555_v36  ;;  %v1561_v63 = vpop.eup %1560 }
 0x510   : > { %v1563_v0 = vpop.eup %1562  ;;  %v653_v1 = vmul.f32 %v1561_v63, %v1553_v35  ;;  %v815_v30 = vpop.permute.xlu2 %814 }
 0x511   : > { %v758_v59 = vpack.c.bf16 %v756_v58, %v756_v58  ;;  %v652_v3 = vmul.f32 %v1563_v0, %v2044_v24 }
 0x512   : > { %v655_v6 = vpack.c.bf16 %v653_v1, %v653_v1 }
 0x513   : > { %v768_v61 = vunpack.c.l.b16 %v758_v59  ;;  %v654_v10 = vpack.c.bf16 %v652_v3, %v652_v3 }
 0x514   : > { %v665_v14 = vunpack.c.l.b16 %v655_v6 }
 0x515   : > { %v769_v62 = vpack.c.b16 %v768_v61, %v767_v60  ;;  %v664_v19 = vunpack.c.l.b16 %v654_v10 }
 0x517   : > { %1405 = vmatmul.msk.bf16.vlgmr.msrb.gmra.mxu3 %vm428_vm2, %v769_v62  ;;  %v666_v21 = vpack.c.b16 %v665_v14, %v664_v19 }
 0x51a   : > { %v659_v2 = vpop.permute.xlu0 %658 }
 0x51b   : > { %v661_v4 = vrot.slane %v659_v2, 4 }
 0x51d   : > { %v668_v12 = vunpack.c.l.b16 %v661_v4  ;;  %v391_v4 = vld [vmem:[#allocation8 + $0x10] sm:$0xf] }
 0x51e   : > { %v657_v7 = vpop.permute.xlu1 %656  ;;  %v899_v6 = vsel %vm485_vm3, %v391_v4, 0 }
 0x51f   : > { %v660_v8 = vrot.slane %v657_v7, 4  ;;  %908 = vmatpush.bf16.msra.mxu3 %v899_v6 }
 0x521   : > { %v667_v13 = vunpack.c.l.b16 %v660_v8 }
 0x522   : > { %v817_v15 = vpop.permute.xlu0 %816 }
 0x523   : > { %v669_v16 = vpack.c.b16 %v668_v12, %v667_v13  ;;  %v822_v17 = vsel %vm407_vm1, %v817_v15, 0 }
 0x524   : > { %831 = vmatpush.bf16.xpose.msrb.mxu0 %v822_v17 }
 0x525   : > { %681 = vmatpush.bf16.msra.mxu2 %v669_v16 }
 0x526   : > { %v918_v28 = vpop.permute.xlu1 %917 }
 0x528   : > { %1402 = vmatmul.msk.bf16.vlgmr.msra.gmra.mxu2 %vm428_vm2, %v666_v21  ;;  %v392_v21 = vld [vmem:[#allocation8 + $0x14] sm:$0xf] }
 0x529   : > { %805 = vmatpush.bf16.msrb.mxu2 %v796_v18 }
 0x52d   : > { %934 = vmatpush.bf16.xpose.msra.mxu2 %v925_v22 }
 0x59a   : > { %v786_v23 = vpop.f32.mrf.mxu3 }
 0x5a2   : > { %v788_v24 = vpop.f32.mrf.mxu3 }
 0x5a3   : > { %v791_v25 = vpack.c.bf16 %v788_v24, %v786_v23 }
 0x5a5   : > { %1406 = vmatmul.msk.bf16.vlgmr.msrb.gmra.mxu2 %vm407_vm1, %v791_v25 }
 0x5ab   : > { %v683_v26 = vpop.f32.mrf.mxu2 }
 0x5b3   : > { %v685_v27 = vpop.f32.mrf.mxu2 }
 0x5b4   : > { %v688_v29 = vpack.c.bf16 %v685_v27, %v683_v26  ;;  %v1002_v26 = vsel %vm485_vm3, %v392_v21, 0 }
 0x5b5   : > { %1410 = vmatmul.msk.bf16.vlgmr.msra.gmra.mxu2 %vm407_vm1, %v918_v28 }
 0x5b6   : > { %1403 = vmatmul.msk.bf16.vlgmr.msra.gmra.mxu0 %vm407_vm1, %v688_v29 }
 0x5c6   : > { %1407 = vmatmul.msk.bf16.vlgmr.msrb.gmra.mxu0 %vm407_vm1, %v815_v30 }
 0x628   : > { %v807_v31 = vpop.f32.mrf.mxu2 }
 0x630   : > { %v809_v32 = vpop.f32.mrf.mxu2 }
 0x633   : > { %v704_v33 = vpop.f32.mrf.mxu0 }
 0x634   : > { %v709_v35 = vadd.f32 %v704_v33, %v2034_v5 }
 0x636   : > { %v2075_v36 = vadd.f32 %v807_v31, %v709_v35 }
 0x638   : > { %v936_v37 = vpop.f32.mrf.mxu2 }
 0x639   : > { %v941_v38 = vsel %vm428_vm2, %v936_v37, -inf }
 0x63a   : > { %942 = vmax.xlane.f32.xlu2 %v941_v38 }
 0x63b   : > { %v706_v40 = vpop.f32.mrf.mxu0 }
 0x63c   : > { %v710_v41 = vadd.f32 %v706_v40, %v2036_v9 }
 0x63e   : > { %v2079_v42 = vadd.f32 %v809_v32, %v710_v41 }
 0x640   : > { %v938_v46 = vpop.f32.mrf.mxu2 }
 0x641   : > { %v944_v48 = vsel %vm428_vm2, %v938_v46, -inf }
 0x643   : > { %v833_v43 = vpop.f32.mrf.mxu0 }
 0x644   : > { %v838_v45 = vsel %vm428_vm2, %v833_v43, -inf }
 0x645   : > { %839 = vmax.xlane.f32.xlu0 %v838_v45 }
 0x64b   : > { %v835_v47 = vpop.f32.mrf.mxu0 }
 0x64c   : > { %v841_v5 = vsel %vm428_vm2, %v835_v47, -inf }
 0x64d   : > { %945 = vmax.xlane.f32.xlu0 %v944_v48  ;;  %842 = vmax.xlane.f32.xlu1 %v841_v5 }
 0x661   : > { %864 = vrot.lane.b32.xlu0 %v1986_v39, %s1807_s17 }
 0x6ad   : > { %v943_v49 = vpop.xlane.xlu2 %942 }
 0x6ae   : > { %v947_v50 = vsub.f32 %v936_v37, %v943_v49 }
 0x6b0   : > { %v949_v9 = vmul.f32 1.442695, %v947_v50 }
 0x6b2   : > { %1564 = vpow2.f32 %v949_v9 }
 0x6b8   : > { %v2086_v51 = vpop.eup %1564  ;;  %v840_v52 = vpop.xlane.xlu0 %839 }
 0x6b9   : > { %v844_v53 = vsub.f32 %v833_v43, %v840_v52  ;;  %v953_v54 = vsel %vm428_vm2, %v2086_v51, 0.0 }
 0x6ba   : > { %954 = vadd.xlane.f32.xlu0 %v953_v54 }
 0x6bb   : > { %v846_v55 = vmul.f32 1.442695, %v844_v53 }
 0x6bd   : > { %1566 = vpow2.f32 %v846_v55 }
 0x6c0   : > { %v946_v56 = vpop.xlane.xlu0 %945  ;;  %v843_v57 = vpop.xlane.xlu1 %842 }
 0x6c1   : > { %v948_v58 = vsub.f32 %v938_v46, %v946_v56  ;;  %v845_v59 = vsub.f32 %v835_v47, %v843_v57 }
 0x6c3   : > { %v1567_v60 = vpop.eup %1566  ;;  %v951_v61 = vmul.f32 1.442695, %v948_v58  ;;  %v848_v62 = vmul.f32 1.442695, %v845_v59 }
 0x6c4   : > { %v850_v63 = vsel %vm428_vm2, %v1567_v60, 0.0 }
 0x6c5   : > { %1568 = vpow2.f32 %v951_v61  ;;  %851 = vadd.xlane.f32.xlu1 %v850_v63 }
 0x6c6   : > { %1570 = vpow2.f32 %v848_v62 }
 0x6cb   : > { %v1569_v0 = vpop.eup %1568 }
 0x6cc   : > { %v1571_v1 = vpop.eup %1570  ;;  %v956_v2 = vsel %vm428_vm2, %v1569_v0, 0.0 }
 0x6cd   : > { %957 = vadd.xlane.f32.xlu1 %v956_v2  ;;  %v853_v3 = vsel %vm428_vm2, %v1571_v1, 0.0 }
 0x6ce   : > { %967 = vrot.lane.b32.xlu0 %v1986_v39, %s1809_s8  ;;  %854 = vadd.xlane.f32.xlu2 %v853_v3 }
 0x6d3   : > { %v865_v10 = vpop.permute.xlu0 %864 }
 0x6d4   : > { %v867_v14 = vrot.slane %v865_v10, 4 }
 0x6d6   : > { %1020 = vrot.lane.b32.xlu0 %v1992_v44, %s1810_s14  ;;  %v874_v22 = vunpack.c.l.b16 %v867_v14 }
 0x6e6   : > { %862 = vrot.lane.b32.xlu2 %v1984_v34, %s1807_s17  ;;  %965 = vrot.lane.b32.xlu1 %v1984_v34, %s1809_s8  ;;  %s1732_s17 = scalar_lea.hbm %s1731_s11, 16 }
 0x6e7   : > { %p1733_p1 = scmp.ne.s32.totalorder %s1731_s11, %s1732_s17 }
 0x6e9   : > { %p1734_p4 = pnand %p1733_p1, %p1930_p3 }
 0x6eb   : > { %p1735_p8 = pneg %p1734_p4 }
 0x6ee   : > { %1022 = vrot.lane.b32.xlu2 %v1992_v44, %s1811_s24  ;;  %1125 = vrot.lane.b32.xlu1 %v1992_v44, %s1812_s29 }
 0x6f6   : > { %1123 = vrot.lane.b32.xlu2 %v1992_v44, %s1813_s12 }
 0x72d   : > { %v955_v18 = vpop.xlane.xlu0 %954 }
 0x738   : > { %v852_v7 = vpop.xlane.xlu1 %851 }
 0x739   : > { %1572 = vrcp.f32 %v852_v7 }
 0x73f   : > { %v1573_v11 = vpop.eup %1572 }
 0x740   : > { %v858_v12 = vmul.f32 %v1573_v11, %v1567_v60  ;;  %v958_v15 = vpop.xlane.xlu1 %957  ;;  %v968_v33 = vpop.permute.xlu0 %967 }
 0x741   : > { %v855_v8 = vpop.xlane.xlu2 %854  ;;  %v970_v38 = vrot.slane %v968_v33, 4 }
 0x742   : > { %1574 = vrcp.f32 %v855_v8  ;;  %v860_v20 = vpack.c.bf16 %v858_v12, %v858_v12 }
 0x743   : > { %1576 = vrcp.f32 %v958_v15  ;;  %v977_v46 = vunpack.c.l.b16 %v970_v38 }
 0x744   : > { %1578 = vrcp.f32 %v955_v18  ;;  %v870_v27 = vunpack.c.l.b16 %v860_v20 }
 0x748   : > { %v1575_v13 = vpop.eup %1574  ;;  %v1021_v58 = vpop.permute.xlu0 %1020 }
 0x749   : > { %v859_v16 = vmul.f32 %v1575_v13, %v1571_v1  ;;  %v863_v17 = vpop.permute.xlu2 %862  ;;  %v1577_v28 = vpop.eup %1576 }
 0x74a   : > { %v866_v19 = vrot.slane %v863_v17, 4  ;;  %v1579_v32 = vpop.eup %1578  ;;  %v962_v35 = vmul.f32 %v1577_v28, %v1569_v0 }
 0x74b   : > { %v861_v44 = vpack.c.bf16 %v859_v16, %v859_v16  ;;  %v961_v37 = vmul.f32 %v1579_v32, %v2086_v51 }
 0x74c   : > { %v873_v23 = vunpack.c.l.b16 %v866_v19  ;;  %v964_v40 = vpack.c.bf16 %v962_v35, %v962_v35 }
 0x74d   : > { %v871_v24 = vunpack.c.l.b16 %v861_v44  ;;  %v963_v45 = vpack.c.bf16 %v961_v37, %v961_v37 }
 0x74e   : > { %v875_v25 = vpack.c.b16 %v874_v22, %v873_v23  ;;  %v974_v48 = vunpack.c.l.b16 %v964_v40 }
 0x74f   : > { %v872_v29 = vpack.c.b16 %v871_v24, %v870_v27  ;;  %v973_v49 = vunpack.c.l.b16 %v963_v45 }
 0x750   : > { %887 = vmatpush.bf16.msrb.mxu1 %v875_v25 }
 0x751   : > { %v1023_v30 = vpop.permute.xlu2 %1022  ;;  %v975_v50 = vpack.c.b16 %v974_v48, %v973_v49 }
 0x752   : > { %v1028_v31 = vsel %vm407_vm1, %v1023_v30, 0 }
 0x753   : > { %1408 = vmatmul.msk.bf16.vlgmr.msrb.gmra.mxu1 %vm428_vm2, %v872_v29  ;;  %1037 = vmatpush.bf16.xpose.msrb.mxu3 %v1028_v31 }
 0x754   : > { %1011 = vmatpush.bf16.msra.mxu1 %v1002_v26 }
 0x758   : > { %v966_v41 = vpop.permute.xlu1 %965 }
 0x759   : > { %v969_v43 = vrot.slane %v966_v41, 4  ;;  %v1124_v59 = vpop.permute.xlu2 %1123 }
 0x75b   : > { %v976_v47 = vunpack.c.l.b16 %v969_v43 }
 0x75d   : > { %v978_v5 = vpack.c.b16 %v977_v46, %v976_v47 }
 0x75f   : > { %990 = vmatpush.bf16.msra.mxu0 %v978_v5 }
 0x760   : > { %v1126_v9 = vpop.permute.xlu1 %1125 }
 0x761   : > { %v1131_v52 = vsel %vm407_vm1, %v1126_v9, 0 }
 0x762   : > { %1411 = vmatmul.msk.bf16.vlgmr.msra.gmra.mxu0 %vm428_vm2, %v975_v50  ;;  %1140 = vmatpush.bf16.xpose.msrb.mxu1 %v1131_v52 }
 0x7d0   : > { %v889_v53 = vpop.f32.mrf.mxu1 }
 0x7d8   : > { %v891_v51 = vpop.f32.mrf.mxu1 }
 0x7d9   : > { %v894_v54 = vpack.c.bf16 %v891_v51, %v889_v53 }
 0x7db   : > { %1409 = vmatmul.msk.bf16.vlgmr.msra.gmra.mxu3 %vm407_vm1, %v894_v54 }
 0x7df   : > { %v992_v55 = vpop.f32.mrf.mxu0 }
 0x7e7   : > { %v994_v56 = vpop.f32.mrf.mxu0 }
 0x7e8   : > { %v997_v57 = vpack.c.bf16 %v994_v56, %v992_v55 }
 0x7ea   : > { %1412 = vmatmul.msk.bf16.vlgmr.msra.gmra.mxu1 %vm407_vm1, %v997_v57 }
 0x7eb   : > { %1413 = vmatmul.msk.bf16.vlgmr.msrb.gmra.mxu3 %vm407_vm1, %v1021_v58 }
 0x7fa   : > { %1416 = vmatmul.msk.bf16.vlgmr.msrb.gmra.mxu1 %vm407_vm1, %v1124_v59 }
 0x85e   : > { %v910_v60 = vpop.f32.mrf.mxu3 }
 0x85f   : > { %v915_v61 = vadd.f32 %v910_v60, %v2075_v36 }
 0x866   : > { %v912_v62 = vpop.f32.mrf.mxu3 }
 0x867   : > { %v916_v63 = vadd.f32 %v912_v62, %v2079_v42  ;;  %v1013_v0 = vpop.f32.mrf.mxu1 }
 0x868   : > { %v2119_v1 = vadd.f32 %v1013_v0, %v915_v61 }
 0x86e   : > { %v1039_v2 = vpop.f32.mrf.mxu3 }
 0x86f   : > { %v1044_v3 = vsel %vm428_vm2, %v1039_v2, -inf  ;;  %v1015_v4 = vpop.f32.mrf.mxu1 }
 0x870   : > { %1045 = vmax.xlane.f32.xlu2 %v1044_v3  ;;  %v2122_v6 = vadd.f32 %v1015_v4, %v916_v63 }
 0x876   : > { %v1041_v10 = vpop.f32.mrf.mxu3 }
 0x877   : > { %v1142_v7 = vpop.f32.mrf.mxu1  ;;  %v1047_v36 = vsel %vm428_vm2, %v1041_v10, -inf }
 0x878   : > { %v1147_v8 = vsel %vm428_vm2, %v1142_v7, -inf }
 0x879   : > { %1148 = vmax.xlane.f32.xlu1 %v1147_v8 }
 0x87f   : > { %v1144_v11 = vpop.f32.mrf.mxu1 }
 0x880   : > { %v1150_v42 = vsel %vm428_vm2, %v1144_v11, -inf }
 0x881   : > { %1048 = vmax.xlane.f32.xlu1 %v1047_v36  ;;  %1151 = vmax.xlane.f32.xlu0 %v1150_v42 }
 0x895   : > { %1171 = vrot.lane.b32.xlu0 %v1984_v34, %s1813_s12 }
 0x8e3   : > { %v1046_v12 = vpop.xlane.xlu2 %1045 }
 0x8e4   : > { %v1050_v13 = vsub.f32 %v1039_v2, %v1046_v12 }
 0x8e6   : > { %v1052_v14 = vmul.f32 1.442695, %v1050_v13 }
 0x8e8   : > { %1580 = vpow2.f32 %v1052_v14 }
 0x8ec   : > { %v1149_v15 = vpop.xlane.xlu1 %1148 }
 0x8ed   : > { %v1153_v16 = vsub.f32 %v1142_v7, %v1149_v15  ;;  %v394_v7 = vld [vmem:[#allocation8 + $0x1c] sm:$0xf] }
 0x8ee   : > { %v1581_v17 = vpop.eup %1580  ;;  %v1208_v8 = vsel %vm485_vm3, %v394_v7, 0 }
 0x8ef   : > { %v1155_v18 = vmul.f32 1.442695, %v1153_v16  ;;  %v1056_v19 = vsel %vm428_vm2, %v1581_v17, 0.0 }
 0x8f0   : > { %1057 = vadd.xlane.f32.xlu1 %v1056_v19 }
 0x8f1   : > { %1582 = vpow2.f32 %v1155_v18 }
 0x8f4   : > { %v1049_v20 = vpop.xlane.xlu1 %1048  ;;  %v1152_v44 = vpop.xlane.xlu0 %1151 }
 0x8f5   : > { %v1051_v21 = vsub.f32 %v1041_v10, %v1049_v20  ;;  %v1154_v22 = vsub.f32 %v1144_v11, %v1152_v44  ;;  %v393_v10 = vld [vmem:[#allocation8 + $0x18] sm:$0xf] }
 0x8f6   : > { %v1105_v11 = vsel %vm485_vm3, %v393_v10, 0 }
 0x8f7   : > { %v1583_v23 = vpop.eup %1582  ;;  %v1054_v24 = vmul.f32 1.442695, %v1051_v21  ;;  %v1157_v25 = vmul.f32 1.442695, %v1154_v22  ;;  %1114 = vmatpush.bf16.msrb.mxu0 %v1105_v11 }
 0x8f8   : > { %v1159_v26 = vsel %vm428_vm2, %v1583_v23, 0.0 }
 0x8f9   : > { %1584 = vpow2.f32 %v1054_v24  ;;  %1160 = vadd.xlane.f32.xlu2 %v1159_v26 }
 0x8fa   : > { %1586 = vpow2.f32 %v1157_v25 }
 0x8ff   : > { %v1585_v27 = vpop.eup %1584 }
 0x900   : > { %v1587_v28 = vpop.eup %1586  ;;  %v1059_v29 = vsel %vm428_vm2, %v1585_v27, 0.0 }
 0x901   : > { %1060 = vadd.xlane.f32.xlu2 %v1059_v29  ;;  %v1162_v30 = vsel %vm428_vm2, %v1587_v28, 0.0 }
 0x902   : > { %1163 = vadd.xlane.f32.xlu0 %v1162_v30 }
 0x907   : > { %v1172_v31 = vpop.permute.xlu0 %1171 }
 0x908   : > { %v1175_v41 = vrot.slane %v1172_v31, 4 }
 0x909   : > { %1173 = vrot.lane.b32.xlu1 %v1986_v39, %s1813_s12 }
 0x90a   : > { %v1182_v48 = vunpack.c.l.b16 %v1175_v41 }
 0x916   : > { %1070 = vrot.lane.b32.xlu0 %v1986_v39, %s1810_s14 }
 0x919   : > { %1068 = vrot.lane.b32.xlu2 %v1984_v34, %s1810_s14  ;;  %s1736_s14 = scalar_lea.hbm %s2190_s5, 32 }
 0x91a   : > { %p1738_p9 = scmp.lt.s32.totalorder %s1736_s14, %s1732_s17 }
 0x91c   : > { %p1739_p2 = por %p1738_p9, %p1737_p11 }
 0x91e   : > { %p1740_p10 = pnand %p1739_p2, %p1735_p8 }
 0x963   : > { %v1058_v33 = vpop.xlane.xlu1 %1057 }
 0x96c   : > { %v1161_v32 = vpop.xlane.xlu2 %1160 }
 0x96d   : > { %1588 = vrcp.f32 %v1161_v32 }
 0x973   : > { %v1589_v37 = vpop.eup %1588 }
 0x974   : > { %v1061_v38 = vpop.xlane.xlu2 %1060  ;;  %v1167_v40 = vmul.f32 %v1589_v37, %v1583_v23 }
 0x975   : > { %v1164_v35 = vpop.xlane.xlu0 %1163 }
 0x976   : > { %1590 = vrcp.f32 %v1164_v35  ;;  %v1169_v47 = vpack.c.bf16 %v1167_v40, %v1167_v40 }
 0x977   : > { %1592 = vrcp.f32 %v1061_v38 }
 0x978   : > { %1594 = vrcp.f32 %v1058_v33  ;;  %v1179_v9 = vunpack.c.l.b16 %v1169_v47 }
 0x97b   : > { %v1174_v43 = vpop.permute.xlu1 %1173 }
 0x97c   : > { %v1591_v45 = vpop.eup %1590  ;;  %v1176_v46 = vrot.slane %v1174_v43, 4  ;;  %v1069_v55 = vpop.permute.xlu2 %1068 }
 0x97d   : > { %v1168_v39 = vmul.f32 %v1591_v45, %v1587_v28  ;;  %v1593_v50 = vpop.eup %1592  ;;  %v1072_v57 = vrot.slane %v1069_v55, 4 }
 0x97e   : > { %v1183_v5 = vunpack.c.l.b16 %v1176_v46  ;;  %v1595_v53 = vpop.eup %1594  ;;  %v1065_v54 = vmul.f32 %v1593_v50, %v1585_v27 }
 0x97f   : > { %v1170_v34 = vpack.c.bf16 %v1168_v39, %v1168_v39  ;;  %v1064_v56 = vmul.f32 %v1595_v53, %v1581_v17  ;;  %v1079_v62 = vunpack.c.l.b16 %v1072_v57 }
 0x980   : > { %v1184_v49 = vpack.c.b16 %v1183_v5, %v1182_v48  ;;  %v1067_v58 = vpack.c.bf16 %v1065_v54, %v1065_v54 }
 0x981   : > { %v1180_v52 = vunpack.c.l.b16 %v1170_v34  ;;  %v1066_v61 = vpack.c.bf16 %v1064_v56, %v1064_v56 }
 0x982   : > { %1196 = vmatpush.bf16.msra.mxu3 %v1184_v49  ;;  %v1077_v0 = vunpack.c.l.b16 %v1067_v58 }
 0x983   : > { %v1181_v51 = vpack.c.b16 %v1180_v52, %v1179_v9  ;;  %v1076_v3 = vunpack.c.l.b16 %v1066_v61 }
 0x985   : > { %1417 = vmatmul.msk.bf16.vlgmr.msra.gmra.mxu3 %vm428_vm2, %v1181_v51  ;;  %v1078_v4 = vpack.c.b16 %v1077_v0, %v1076_v3 }
 0x988   : > { %v1071_v59 = vpop.permute.xlu0 %1070 }
 0x989   : > { %v1073_v60 = vrot.slane %v1071_v59, 4 }
 0x98b   : > { %v1080_v63 = vunpack.c.l.b16 %v1073_v60 }
 0x98d   : > { %v1081_v2 = vpack.c.b16 %v1080_v63, %v1079_v62 }
 0x98f   : > { %1093 = vmatpush.bf16.msrb.mxu2 %v1081_v2 }
 0x992   : > { %1414 = vmatmul.msk.bf16.vlgmr.msrb.gmra.mxu2 %vm428_vm2, %v1078_v4 }
 0x993   : > { %1217 = vmatpush.bf16.msra.mxu2 %v1208_v8 }
 0xa08   : > { %v1198_v36 = vpop.f32.mrf.mxu3 }
 0xa10   : > { %v1200_v42 = vpop.f32.mrf.mxu3 }
 0xa11   : > { %v1203_v12 = vpack.c.bf16 %v1200_v42, %v1198_v36 }
 0xa13   : > { %1418 = vmatmul.msk.bf16.vlgmr.msra.gmra.mxu2 %vm407_vm1, %v1203_v12 }
 0xa15   : > { %v1095_v13 = vpop.f32.mrf.mxu2 }
 0xa1d   : > { %v1097_v14 = vpop.f32.mrf.mxu2 }
 0xa1e   : > { %v1100_v15 = vpack.c.bf16 %v1097_v14, %v1095_v13 }
 0xa20   : > { %1415 = vmatmul.msk.bf16.vlgmr.msrb.gmra.mxu0 %vm407_vm1, %v1100_v15 }
 0xa96   : > { %v1219_v16 = vpop.f32.mrf.mxu2 }
 0xa9d   : > { %v1116_v17 = vpop.f32.mrf.mxu0 }
 0xa9e   : > { %v1121_v18 = vadd.f32 %v1116_v17, %v2119_v1  ;;  %v1221_v21 = vpop.f32.mrf.mxu2 }
 0xaa0   : > { %v1224_v19 = vadd.f32 %v1219_v16, %v1121_v18 }
 0xaa2   : > { %1226 = vst.msk [vmem:[%s292_s27] sm:$0xff] %vm353_vm0, %v1224_v19 }
 0xaa5   : > { %v1118_v20 = vpop.f32.mrf.mxu0 }
 0xaa6   : > { %v1122_v44 = vadd.f32 %v1118_v20, %v2122_v6 }
 0xaa8   : > { %v1225_v22 = vadd.f32 %v1221_v21, %v1122_v44 }
 0xaaa   : > { %1227 = vst.msk [vmem:[%s292_s27 + $0x8] sm:$0xff] %vm353_vm0, %v1225_v22 }
 0xaab   : > { %1743 = shalt.err (!%p1740_p10)
}
 0xaac   : > { %s1814_s26 = smov 128  }
 0xaad   : > { %1448 = dma.vmem_to_hbm [thread:$0]  (%p1930_p3), %s1242_s7, 256, %s1244_s16, %s1229_s22, %s1814_s26, %s1814_s26, %s1812_s29  }
 0xaae PF: > { %s1258_s23 = sand.u32 1, %s1778_s18   ;;  %p2199_p12 = scmp.ge.s32.totalorder %s1790_s21, 2 }
 0xaaf   : > { %s1259_s27 = scalar_lea.sflag [#allocation4], %s1258_s23 }
 0xab0   : > { %p1465_p13 = pnand %p2199_p12, %p1880_p6 }
 0xab2   : > { %p1466_p0 = pneg %p1465_p13 }
 0xab4   : > { %1773 = dma.done.wait (%p1466_p0), %s1259_s27, 256  }
 0xab5   : > { %1775 = vsyncadd (%p1466_p0), %s1259_s27, 4294967040  ;;  %p20_p5 = scmp.ge.s32.totalorder %s1917_s30, 4   ;;  %s2200_s18 = smov %s1782_s19 }
 0xab6   : > { %s2201_s19 = smov %s1786_s20  ;;  %s2202_s20 = smov %s1926_s9 }
 0xab7   : > { %s2203_s21 = smov %s1917_s30  ;;  %22 = sbr.rel (!%p20_p5) target bundleno = 7 (0x7), region = 97 }
 0xabc   :  { %1265 = vsyncpa [#allocation3], 1 }
 0xabd   :  { %1267 = vsyncpa [#allocation3 + $0x1], 1 }
 0xabe   :  { %1268 = vsyncpa [#allocation6], 1 }
 0xabf   :  { %1269 = vsyncpa [#allocation9], 1 }
 0xac0   :  { %1270 = vsyncpa [#allocation4], 1 }
 0xac1   :  { %1272 = vsyncpa [#allocation4 + $0x1], 1 }

</bundles_post_ra>
